<compile_context>
chip_gen: v7x
topology: tpu7x:2x2x1
jax: 0.10.0
libtpu: 0.0.40
codegen_flags: <defaults>
</compile_context>

<pallas_src>
import jax
import jax.numpy as jnp
from jax.experimental import pallas as pl
from jax.experimental.pallas import tpu as pltpu


# ----------------------- fused bidirectional GRU kernel (block-diagonal gates) -----------------------
def _fused_bigru_kernel(xx_ref, wih_ref, bih_ref, whh_ref, bhn_ref,
                        out_ref, hid_ref,
                        pre_ref, outf_ref, outb_ref):
    # xx_ref:  (T*B, 2I)  rows are [x[s] | x[T-1-s]]  (backward half pre-reversed in time)
    # wih_ref: (2I, 6H)   block-diagonal input weights, gate cols [r_f,r_b,z_f,z_b,n_f,n_b]
    # bih_ref: (1, 6H)    folded input bias (r/z: b_ih+b_hh ; n: b_ih only)
    # whh_ref: (2H, 6H)   block-diagonal recurrent weights (rows 0:H -> h_f, H:2H -> h_b)
    # bhn_ref: (1, 2H)    n-gate hidden bias [b_hn_f | b_hn_b] (stays inside the r*(...) term)
    # out_ref: (T, B, H)  fwd + bwd halves summed
    # hid_ref: (2, B, H)  final hidden [forward, backward]
    T, B, H = out_ref.shape
    H2, H4 = 2 * H, 4 * H

    # ---- ONE fused input projection for all 6 gates of both directions, biases folded in.
    pre_ref[...] = (jnp.dot(xx_ref[...], wih_ref[...],
                            preferred_element_type=jnp.float32) + bih_ref[...])

    # ---- Hoist recurrent weights and the n-gate hidden-bias broadcast out of the time loop.
    whh = whh_ref[...]                                       # (2H, 6H)
    bhn = jnp.broadcast_to(bhn_ref[...], (B, H2))            # hoisted (JAX won't CSE it in-loop)

    def step(s, hc):                                         # hc = [h_f | h_b]  (B, 2H)
        row = pl.multiple_of(s * B, B)
        pre = pre_ref[pl.ds(row, B), :]                      # (B, 6H)
        gh = jnp.dot(hc, whh, preferred_element_type=jnp.float32)   # ONE matmul / step
        rz = jax.nn.sigmoid(pre[:, :H4] + gh[:, :H4])        # ONE sigmoid: [r_f,r_b,z_f,z_b]
        r = rz[:, :H2]                                       # [r_f | r_b]
        z = rz[:, H2:]                                       # [z_f | z_b]
        n = jnp.tanh(pre[:, H4:] + r * (gh[:, H4:] + bhn))   # ONE tanh:    [n_f | n_b]
        hc = (1.0 - z) * n + z * hc                          # both directions updated at once
        outf_ref[pl.ds(s, 1), :, :] = hc[:, :H][None]            # fwd half, time s
        outb_ref[pl.ds(T - 1 - s, 1), :, :] = hc[:, H:][None]    # bwd half, original time T-1-s
        return hc

    hc_fin = jax.lax.fori_loop(0, T, step, jnp.zeros((B, H2), jnp.float32), unroll=True)

    hid_ref[0] = hc_fin[:, :H]
    hid_ref[1] = hc_fin[:, H:]
    # torch: outputs[:, :, :H] + outputs[:, :, H:]
    out_ref[...] = outf_ref[...] + outb_ref[...]


# ---------------------------- one-time parameter preprocessing (hoisted) ----------------------------
def prepare_params(params):
    """Pack both GRU directions into block-diagonal fused weights.

    Gate-column order [r_f, r_b, z_f, z_b, n_f, n_b] lets the kernel do ONE matmul,
    ONE sigmoid and ONE tanh per time step. Run once per model, outside the jitted forward."""
    H = params["w_hh_f"].shape[1]
    I = params["w_ih_f"].shape[1]
    f32 = jnp.float32

    def gates(w):    # (3H, X) -> transposed per-gate (X, H)
        return w[:H].T.astype(f32), w[H:2 * H].T.astype(f32), w[2 * H:].T.astype(f32)

    def bgates(b):   # (3H,) -> per-gate (H,)
        return b[:H].astype(f32), b[H:2 * H].astype(f32), b[2 * H:].astype(f32)

    wir_f, wiz_f, win_f = gates(params["w_ih_f"])
    wir_b, wiz_b, win_b = gates(params["w_ih_b"])
    whr_f, whz_f, whn_f = gates(params["w_hh_f"])
    whr_b, whz_b, whn_b = gates(params["w_hh_b"])
    bir_f, biz_f, bin_f = bgates(params["b_ih_f"])
    bir_b, biz_b, bin_b = bgates(params["b_ih_b"])
    bhr_f, bhz_f, bhn_f = bgates(params["b_hh_f"])
    bhr_b, bhz_b, bhn_b = bgates(params["b_hh_b"])

    zi = jnp.zeros((I, H), f32)
    zh = jnp.zeros((H, H), f32)

    # (2I, 6H): rows 0:I act on x[s] (forward), rows I:2I act on x[T-1-s] (backward).
    wih = jnp.concatenate([
        jnp.concatenate([wir_f, zi, wiz_f, zi, win_f, zi], axis=1),
        jnp.concatenate([zi, wir_b, zi, wiz_b, zi, win_b], axis=1)], axis=0)

    # (2H, 6H): rows 0:H act on h_f, rows H:2H act on h_b.
    whh = jnp.concatenate([
        jnp.concatenate([whr_f, zh, whz_f, zh, whn_f, zh], axis=1),
        jnp.concatenate([zh, whr_b, zh, whz_b, zh, whn_b], axis=1)], axis=0)

    # Folded input-side bias: r/z gates get b_ih + b_hh, n gates get b_ih only.
    bih = jnp.concatenate([bir_f + bhr_f, bir_b + bhr_b,
                           biz_f + bhz_f, biz_b + bhz_b,
                           bin_f, bin_b]).reshape(1, 6 * H)

    # Hidden-side n-gate bias (applied inside the r * (...) term each step).
    bhn = jnp.concatenate([bhn_f, bhn_b]).reshape(1, 2 * H)

    return {"wih": wih, "whh": whh, "bih": bih, "bhn": bhn}


# ------------------------------------------ full forward ------------------------------------------
@jax.jit
def luong_attn_encoder_forward(input_seq, encoder_outputs, prep):
    """Mirrors LuongAttnEncoderRNN.forward: returns (outputs, hidden).

    The torch forward also computes an attention/concat/out branch whose result is discarded
    (only (outputs, hidden) are returned), so that dead code is omitted here; encoder_outputs
    is accepted for API fidelity but unused."""
    del encoder_outputs
    T, B, I = input_seq.shape
    H = prep["whh"].shape[0] // 2
    H6 = 6 * H

    # Per-call input prep: rows [x[s] | x[T-1-s]] feed the block-diagonal input projection,
    # so the backward direction arrives already time-reversed.
    xx = jnp.concatenate([input_seq, input_seq[::-1]], axis=-1)
    xx = xx.reshape(T * B, 2 * I).astype(jnp.float32)

    grid_spec = pltpu.PrefetchScalarGridSpec(
        num_scalar_prefetch=0,
        grid=(1,),
        in_specs=[
            pl.BlockSpec((T * B, 2 * I), lambda i: (0, 0)),   # xx
            pl.BlockSpec((2 * I, H6), lambda i: (0, 0)),      # wih (block-diagonal)
            pl.BlockSpec((1, H6), lambda i: (0, 0)),          # bih (folded)
            pl.BlockSpec((2 * H, H6), lambda i: (0, 0)),      # whh (block-diagonal)
            pl.BlockSpec((1, 2 * H), lambda i: (0, 0)),       # bhn
        ],
        out_specs=(
            pl.BlockSpec((T, B, H), lambda i: (0, 0, 0)),     # outputs (fwd + bwd summed)
            pl.BlockSpec((2, B, H), lambda i: (0, 0, 0)),     # hidden [forward, backward]
        ),
        scratch_shapes=[
            pltpu.VMEM((T * B, H6), jnp.float32),   # fused gate pre-activations (lane-dense)
            pltpu.VMEM((T, B, H), jnp.float32),     # forward-direction output sequence
            pltpu.VMEM((T, B, H), jnp.float32),     # backward-direction output sequence
        ],
    )

    outputs, hidden = pl.pallas_call(
        _fused_bigru_kernel,
        grid_spec=grid_spec,
        out_shape=(jax.ShapeDtypeStruct((T, B, H), jnp.float32),
                   jax.ShapeDtypeStruct((2, B, H), jnp.float32)),
        compiler_params=pltpu.CompilerParams(dimension_semantics=("arbitrary",)),
    )(xx, prep["wih"], prep["bih"], prep["whh"], prep["bhn"])

    return outputs, hidden


# ------------------------------ pure-JAX reference (for checking) ------------------------------
def _ref_gru_dir(x, w_ih, w_hh, b_ih, b_hh):
    T, B, _ = x.shape
    H = w_hh.shape[1]
    hp = jax.lax.Precision.HIGHEST
    h = jnp.zeros((B, H), jnp.float32)
    outs = []
    for t in range(T):
        gi = jnp.dot(x[t], w_ih.T, precision=hp) + b_ih
        gh = jnp.dot(h, w_hh.T, precision=hp) + b_hh
        r = jax.nn.sigmoid(gi[:, :H] + gh[:, :H])
        z = jax.nn.sigmoid(gi[:, H:2 * H] + gh[:, H:2 * H])
        n = jnp.tanh(gi[:, 2 * H:] + r * gh[:, 2 * H:])
        h = (1.0 - z) * n + z * h
        outs.append(h)
    return jnp.stack(outs, 0), h


def reference_forward(input_seq, params):
    out_f, h_f = _ref_gru_dir(input_seq, params["w_ih_f"], params["w_hh_f"],
                              params["b_ih_f"], params["b_hh_f"])
    out_b_rev, h_b = _ref_gru_dir(input_seq[::-1], params["w_ih_b"], params["w_hh_b"],
                                  params["b_ih_b"], params["b_hh_b"])
    return out_f + out_b_rev[::-1], jnp.stack([h_f, h_b], axis=0)


if __name__ == "__main__":
    T, B, I, H = 8, 8, 16, 32          # seq len, batch, input_size, hidden_size

    key = jax.random.PRNGKey(0)
    ks = jax.random.split(key, 16)
    bound = 1.0 / jnp.sqrt(jnp.float32(H))

    def u(k, shape):
        return jax.random.uniform(k, shape, jnp.float32, -bound, bound)

    params = {
        # GRU forward direction (weight_ih_l0, weight_hh_l0, bias_ih_l0, bias_hh_l0)
        "w_ih_f": u(ks[0], (3 * H, I)), "w_hh_f": u(ks[1], (3 * H, H)),
        "b_ih_f": u(ks[2], (3 * H,)),   "b_hh_f": u(ks[3], (3 * H,)),
        # GRU reverse direction (*_l0_reverse)
        "w_ih_b": u(ks[4], (3 * H, I)), "w_hh_b": u(ks[5], (3 * H, H)),
        "b_ih_b": u(ks[6], (3 * H,)),   "b_hh_b": u(ks[7], (3 * H,)),
        # concat / out linears exist on the module but only feed the discarded branch
        "w_concat": u(ks[8], (H, 2 * H)), "b_concat": u(ks[9], (H,)),
        "w_out": u(ks[10], (H, H)),       "b_out": u(ks[11], (H,)),
    }

    input_seq = jax.random.normal(ks[12], (T, B, I), jnp.float32)
    encoder_outputs = jax.random.normal(ks[13], (T, B, H), jnp.float32)

    prep = prepare_params(params)   # one-time, hoisted out of the per-call path
    outputs, hidden = luong_attn_encoder_forward(input_seq, encoder_outputs, prep)
    jax.block_until_ready((outputs, hidden))

    ref_outputs, ref_hidden = reference_forward(input_seq, params)
    assert outputs.shape == (T, B, H) and hidden.shape == (2, B, H)
    # Tolerance allows for MXU default-precision f32 matmuls inside the kernel vs the
    # HIGHEST-precision XLA reference across the T-step recurrence.
    assert jnp.allclose(outputs, ref_outputs, atol=5e-3, rtol=5e-3), \
        float(jnp.max(jnp.abs(outputs - ref_outputs)))
    assert jnp.allclose(hidden, ref_hidden, atol=5e-3, rtol=5e-3), \
        float(jnp.max(jnp.abs(hidden - ref_hidden)))

    print("KERNEL_OK")
</pallas_src>

<mosaic_0001>
module attributes {stable_mosaic.version = 11 : i64} {
  func.func @_fused_bigru_kernel(%arg0: i32, %arg1: memref<64x32xf32, #tpu.memory_space<vmem>>, %arg2: memref<32x192xf32, #tpu.memory_space<vmem>>, %arg3: memref<1x192xf32, #tpu.memory_space<vmem>>, %arg4: memref<64x192xf32, #tpu.memory_space<vmem>>, %arg5: memref<1x64xf32, #tpu.memory_space<vmem>>, %arg6: memref<8x8x32xf32, #tpu.memory_space<vmem>>, %arg7: memref<2x8x32xf32, #tpu.memory_space<vmem>>, %arg8: memref<64x192xf32, #tpu.memory_space<vmem>>, %arg9: memref<8x8x32xf32, #tpu.memory_space<vmem>>, %arg10: memref<8x8x32xf32, #tpu.memory_space<vmem>>) attributes {dimension_semantics = [#tpu.dimension_semantics<arbitrary>], iteration_bounds = array<i64: 1>, scalar_prefetch = 0 : i64, scratch_operands = 3 : i64, tpu.core_type = #tpu.core_type<tc>, window_params = [{pipeline_mode = #tpu.pipeline_mode<synchronous>, transform_indices = @transform_0, window_bounds = array<i64: 64, 32>}, {pipeline_mode = #tpu.pipeline_mode<synchronous>, transform_indices = @transform_1, window_bounds = array<i64: 32, 192>}, {pipeline_mode = #tpu.pipeline_mode<synchronous>, transform_indices = @transform_2, window_bounds = array<i64: 1, 192>}, {pipeline_mode = #tpu.pipeline_mode<synchronous>, transform_indices = @transform_3, window_bounds = array<i64: 64, 192>}, {pipeline_mode = #tpu.pipeline_mode<synchronous>, transform_indices = @transform_4, window_bounds = array<i64: 1, 64>}, {pipeline_mode = #tpu.pipeline_mode<synchronous>, transform_indices = @transform_5, window_bounds = array<i64: 8, 8, 32>}, {pipeline_mode = #tpu.pipeline_mode<synchronous>, transform_indices = @transform_6, window_bounds = array<i64: 2, 8, 32>}]} {
    %c0 = arith.constant 0 : index
    %c0_0 = arith.constant 0 : index
    %0 = vector.load %arg1[%c0, %c0_0] : memref<64x32xf32, #tpu.memory_space<vmem>>, vector<64x32xf32>
    %c0_1 = arith.constant 0 : index
    %c0_2 = arith.constant 0 : index
    %1 = vector.load %arg2[%c0_1, %c0_2] : memref<32x192xf32, #tpu.memory_space<vmem>>, vector<32x192xf32>
    %cst = arith.constant dense<0.000000e+00> : vector<64x192xf32>
    %2 = tpu.matmul %0, %1, %cst {dimension_numbers = #tpu.dot_dimension_numbers<[1], [0], [0], [1], [0, 0, 1, 1], [], []>} : vector<64x32xf32>, vector<32x192xf32>, vector<64x192xf32> -> vector<64x192xf32>
    %c0_3 = arith.constant 0 : index
    %c0_4 = arith.constant 0 : index
    %3 = vector.load %arg3[%c0_3, %c0_4] : memref<1x192xf32, #tpu.memory_space<vmem>>, vector<1x192xf32>
    %4 = vector.broadcast %3 : vector<1x192xf32> to vector<64x192xf32>
    %5 = arith.addf %2, %4 : vector<64x192xf32>
    %c0_5 = arith.constant 0 : index
    %c0_6 = arith.constant 0 : index
    %6 = vector.load %arg8[%c0_5, %c0_6] : memref<64x192xf32, #tpu.memory_space<vmem>>, vector<64x192xf32>
    tpu.vector_store %arg8[%c0_5, %c0_6], %5 {strides = array<i32>} : memref<64x192xf32, #tpu.memory_space<vmem>>, vector<64x192xf32>,
    %c0_7 = arith.constant 0 : index
    %c0_8 = arith.constant 0 : index
    %7 = vector.load %arg4[%c0_7, %c0_8] : memref<64x192xf32, #tpu.memory_space<vmem>>, vector<64x192xf32>
    %c0_9 = arith.constant 0 : index
    %c0_10 = arith.constant 0 : index
    %8 = vector.load %arg5[%c0_9, %c0_10] : memref<1x64xf32, #tpu.memory_space<vmem>>, vector<1x64xf32>
    %9 = vector.shape_cast %8 : vector<1x64xf32> to vector<1x64xf32>
    %10 = vector.broadcast %9 : vector<1x64xf32> to vector<8x64xf32>
    %cst_11 = arith.constant 0.000000e+00 : f32
    %11 = vector.broadcast %cst_11 : f32 to vector<8x64xf32>
    %c0_i32 = arith.constant 0 : i32
    %c8_i32 = arith.constant 8 : i32
    %12 = arith.muli %c0_i32, %c8_i32 : i32
    %13 = tpu.assume_multiple %12, 8 : i32
    %14 = arith.index_cast %13 : i32 to index
    %c0_12 = arith.constant 0 : index
    %15 = vector.load %arg8[%14, %c0_12] : memref<64x192xf32, #tpu.memory_space<vmem>>, vector<8x192xf32>
    %cst_13 = arith.constant dense<0.000000e+00> : vector<8x192xf32>
    %16 = tpu.matmul %11, %7, %cst_13 {dimension_numbers = #tpu.dot_dimension_numbers<[1], [0], [0], [1], [0, 0, 1, 1], [], []>} : vector<8x64xf32>, vector<64x192xf32>, vector<8x192xf32> -> vector<8x192xf32>
    %17 = vector.extract_strided_slice %15 {offsets = [0, 0], sizes = [8, 128], strides = [1, 1]} : vector<8x192xf32> to vector<8x128xf32>
    %18 = vector.extract_strided_slice %16 {offsets = [0, 0], sizes = [8, 128], strides = [1, 1]} : vector<8x192xf32> to vector<8x128xf32>
    %19 = arith.addf %17, %18 : vector<8x128xf32>
    %20 = arith.negf %19 : vector<8x128xf32>
    %21 = math.exp %20 : vector<8x128xf32>
    %cst_14 = arith.constant 1.000000e+00 : f32
    %22 = vector.broadcast %cst_14 : f32 to vector<8x128xf32>
    %23 = arith.addf %22, %21 : vector<8x128xf32>
    %24 = arith.divf %22, %23 : vector<8x128xf32>
    %25 = vector.extract_strided_slice %24 {offsets = [0, 0], sizes = [8, 64], strides = [1, 1]} : vector<8x128xf32> to vector<8x64xf32>
    %26 = vector.extract_strided_slice %24 {offsets = [0, 64], sizes = [8, 64], strides = [1, 1]} : vector<8x128xf32> to vector<8x64xf32>
    %27 = vector.extract_strided_slice %15 {offsets = [0, 128], sizes = [8, 64], strides = [1, 1]} : vector<8x192xf32> to vector<8x64xf32>
    %28 = vector.extract_strided_slice %16 {offsets = [0, 128], sizes = [8, 64], strides = [1, 1]} : vector<8x192xf32> to vector<8x64xf32>
    %29 = arith.addf %28, %10 : vector<8x64xf32>
    %30 = arith.mulf %25, %29 : vector<8x64xf32>
    %31 = arith.addf %27, %30 : vector<8x64xf32>
    %32 = math.tanh %31 : vector<8x64xf32>
    %cst_15 = arith.constant 1.000000e+00 : f32
    %33 = vector.broadcast %cst_15 : f32 to vector<8x64xf32>
    %34 = arith.subf %33, %26 : vector<8x64xf32>
    %35 = arith.mulf %34, %32 : vector<8x64xf32>
    %36 = arith.mulf %26, %11 : vector<8x64xf32>
    %37 = arith.addf %35, %36 : vector<8x64xf32>
    %38 = vector.extract_strided_slice %37 {offsets = [0, 0], sizes = [8, 32], strides = [1, 1]} : vector<8x64xf32> to vector<8x32xf32>
    %39 = vector.shape_cast %38 : vector<8x32xf32> to vector<1x8x32xf32>
    %40 = arith.index_cast %c0_i32 : i32 to index
    %c0_16 = arith.constant 0 : index
    %c0_17 = arith.constant 0 : index
    %41 = vector.load %arg9[%40, %c0_16, %c0_17] : memref<8x8x32xf32, #tpu.memory_space<vmem>>, vector<1x8x32xf32>
    tpu.vector_store %arg9[%40, %c0_16, %c0_17], %39 {strides = array<i32>} : memref<8x8x32xf32, #tpu.memory_space<vmem>>, vector<1x8x32xf32>,
    %42 = vector.extract_strided_slice %37 {offsets = [0, 32], sizes = [8, 32], strides = [1, 1]} : vector<8x64xf32> to vector<8x32xf32>
    %43 = vector.shape_cast %42 : vector<8x32xf32> to vector<1x8x32xf32>
    %c7_i32 = arith.constant 7 : i32
    %44 = arith.subi %c7_i32, %c0_i32 : i32
    %45 = arith.index_cast %44 : i32 to index
    %c0_18 = arith.constant 0 : index
    %c0_19 = arith.constant 0 : index
    %46 = vector.load %arg10[%45, %c0_18, %c0_19] : memref<8x8x32xf32, #tpu.memory_space<vmem>>, vector<1x8x32xf32>
    tpu.vector_store %arg10[%45, %c0_18, %c0_19], %43 {strides = array<i32>} : memref<8x8x32xf32, #tpu.memory_space<vmem>>, vector<1x8x32xf32>,
    %c1_i32 = arith.constant 1 : i32
    %c8_i32_20 = arith.constant 8 : i32
    %47 = arith.muli %c1_i32, %c8_i32_20 : i32
    %48 = tpu.assume_multiple %47, 8 : i32
    %49 = arith.index_cast %48 : i32 to index
    %c0_21 = arith.constant 0 : index
    %50 = vector.load %arg8[%49, %c0_21] : memref<64x192xf32, #tpu.memory_space<vmem>>, vector<8x192xf32>
    %cst_22 = arith.constant dense<0.000000e+00> : vector<8x192xf32>
    %51 = tpu.matmul %37, %7, %cst_22 {dimension_numbers = #tpu.dot_dimension_numbers<[1], [0], [0], [1], [0, 0, 1, 1], [], []>} : vector<8x64xf32>, vector<64x192xf32>, vector<8x192xf32> -> vector<8x192xf32>
    %52 = vector.extract_strided_slice %50 {offsets = [0, 0], sizes = [8, 128], strides = [1, 1]} : vector<8x192xf32> to vector<8x128xf32>
    %53 = vector.extract_strided_slice %51 {offsets = [0, 0], sizes = [8, 128], strides = [1, 1]} : vector<8x192xf32> to vector<8x128xf32>
    %54 = arith.addf %52, %53 : vector<8x128xf32>
    %55 = arith.negf %54 : vector<8x128xf32>
    %56 = math.exp %55 : vector<8x128xf32>
    %cst_23 = arith.constant 1.000000e+00 : f32
    %57 = vector.broadcast %cst_23 : f32 to vector<8x128xf32>
    %58 = arith.addf %57, %56 : vector<8x128xf32>
    %59 = arith.divf %57, %58 : vector<8x128xf32>
    %60 = vector.extract_strided_slice %59 {offsets = [0, 0], sizes = [8, 64], strides = [1, 1]} : vector<8x128xf32> to vector<8x64xf32>
    %61 = vector.extract_strided_slice %59 {offsets = [0, 64], sizes = [8, 64], strides = [1, 1]} : vector<8x128xf32> to vector<8x64xf32>
    %62 = vector.extract_strided_slice %50 {offsets = [0, 128], sizes = [8, 64], strides = [1, 1]} : vector<8x192xf32> to vector<8x64xf32>
    %63 = vector.extract_strided_slice %51 {offsets = [0, 128], sizes = [8, 64], strides = [1, 1]} : vector<8x192xf32> to vector<8x64xf32>
    %64 = arith.addf %63, %10 : vector<8x64xf32>
    %65 = arith.mulf %60, %64 : vector<8x64xf32>
    %66 = arith.addf %62, %65 : vector<8x64xf32>
    %67 = math.tanh %66 : vector<8x64xf32>
    %cst_24 = arith.constant 1.000000e+00 : f32
    %68 = vector.broadcast %cst_24 : f32 to vector<8x64xf32>
    %69 = arith.subf %68, %61 : vector<8x64xf32>
    %70 = arith.mulf %69, %67 : vector<8x64xf32>
    %71 = arith.mulf %61, %37 : vector<8x64xf32>
    %72 = arith.addf %70, %71 : vector<8x64xf32>
    %73 = vector.extract_strided_slice %72 {offsets = [0, 0], sizes = [8, 32], strides = [1, 1]} : vector<8x64xf32> to vector<8x32xf32>
    %74 = vector.shape_cast %73 : vector<8x32xf32> to vector<1x8x32xf32>
    %75 = arith.index_cast %c1_i32 : i32 to index
    %c0_25 = arith.constant 0 : index
    %c0_26 = arith.constant 0 : index
    %76 = vector.load %arg9[%75, %c0_25, %c0_26] : memref<8x8x32xf32, #tpu.memory_space<vmem>>, vector<1x8x32xf32>
    tpu.vector_store %arg9[%75, %c0_25, %c0_26], %74 {strides = array<i32>} : memref<8x8x32xf32, #tpu.memory_space<vmem>>, vector<1x8x32xf32>,
    %77 = vector.extract_strided_slice %72 {offsets = [0, 32], sizes = [8, 32], strides = [1, 1]} : vector<8x64xf32> to vector<8x32xf32>
    %78 = vector.shape_cast %77 : vector<8x32xf32> to vector<1x8x32xf32>
    %c7_i32_27 = arith.constant 7 : i32
    %79 = arith.subi %c7_i32_27, %c1_i32 : i32
    %80 = arith.index_cast %79 : i32 to index
    %c0_28 = arith.constant 0 : index
    %c0_29 = arith.constant 0 : index
    %81 = vector.load %arg10[%80, %c0_28, %c0_29] : memref<8x8x32xf32, #tpu.memory_space<vmem>>, vector<1x8x32xf32>
    tpu.vector_store %arg10[%80, %c0_28, %c0_29], %78 {strides = array<i32>} : memref<8x8x32xf32, #tpu.memory_space<vmem>>, vector<1x8x32xf32>,
    %c2_i32 = arith.constant 2 : i32
    %c8_i32_30 = arith.constant 8 : i32
    %82 = arith.muli %c2_i32, %c8_i32_30 : i32
    %83 = tpu.assume_multiple %82, 8 : i32
    %84 = arith.index_cast %83 : i32 to index
    %c0_31 = arith.constant 0 : index
    %85 = vector.load %arg8[%84, %c0_31] : memref<64x192xf32, #tpu.memory_space<vmem>>, vector<8x192xf32>
    %cst_32 = arith.constant dense<0.000000e+00> : vector<8x192xf32>
    %86 = tpu.matmul %72, %7, %cst_32 {dimension_numbers = #tpu.dot_dimension_numbers<[1], [0], [0], [1], [0, 0, 1, 1], [], []>} : vector<8x64xf32>, vector<64x192xf32>, vector<8x192xf32> -> vector<8x192xf32>
    %87 = vector.extract_strided_slice %85 {offsets = [0, 0], sizes = [8, 128], strides = [1, 1]} : vector<8x192xf32> to vector<8x128xf32>
    %88 = vector.extract_strided_slice %86 {offsets = [0, 0], sizes = [8, 128], strides = [1, 1]} : vector<8x192xf32> to vector<8x128xf32>
    %89 = arith.addf %87, %88 : vector<8x128xf32>
    %90 = arith.negf %89 : vector<8x128xf32>
    %91 = math.exp %90 : vector<8x128xf32>
    %cst_33 = arith.constant 1.000000e+00 : f32
    %92 = vector.broadcast %cst_33 : f32 to vector<8x128xf32>
    %93 = arith.addf %92, %91 : vector<8x128xf32>
    %94 = arith.divf %92, %93 : vector<8x128xf32>
    %95 = vector.extract_strided_slice %94 {offsets = [0, 0], sizes = [8, 64], strides = [1, 1]} : vector<8x128xf32> to vector<8x64xf32>
    %96 = vector.extract_strided_slice %94 {offsets = [0, 64], sizes = [8, 64], strides = [1, 1]} : vector<8x128xf32> to vector<8x64xf32>
    %97 = vector.extract_strided_slice %85 {offsets = [0, 128], sizes = [8, 64], strides = [1, 1]} : vector<8x192xf32> to vector<8x64xf32>
    %98 = vector.extract_strided_slice %86 {offsets = [0, 128], sizes = [8, 64], strides = [1, 1]} : vector<8x192xf32> to vector<8x64xf32>
    %99 = arith.addf %98, %10 : vector<8x64xf32>
    %100 = arith.mulf %95, %99 : vector<8x64xf32>
    %101 = arith.addf %97, %100 : vector<8x64xf32>
    %102 = math.tanh %101 : vector<8x64xf32>
    %cst_34 = arith.constant 1.000000e+00 : f32
    %103 = vector.broadcast %cst_34 : f32 to vector<8x64xf32>
    %104 = arith.subf %103, %96 : vector<8x64xf32>
    %105 = arith.mulf %104, %102 : vector<8x64xf32>
    %106 = arith.mulf %96, %72 : vector<8x64xf32>
    %107 = arith.addf %105, %106 : vector<8x64xf32>
    %108 = vector.extract_strided_slice %107 {offsets = [0, 0], sizes = [8, 32], strides = [1, 1]} : vector<8x64xf32> to vector<8x32xf32>
    %109 = vector.shape_cast %108 : vector<8x32xf32> to vector<1x8x32xf32>
    %110 = arith.index_cast %c2_i32 : i32 to index
    %c0_35 = arith.constant 0 : index
    %c0_36 = arith.constant 0 : index
    %111 = vector.load %arg9[%110, %c0_35, %c0_36] : memref<8x8x32xf32, #tpu.memory_space<vmem>>, vector<1x8x32xf32>
    tpu.vector_store %arg9[%110, %c0_35, %c0_36], %109 {strides = array<i32>} : memref<8x8x32xf32, #tpu.memory_space<vmem>>, vector<1x8x32xf32>,
    %112 = vector.extract_strided_slice %107 {offsets = [0, 32], sizes = [8, 32], strides = [1, 1]} : vector<8x64xf32> to vector<8x32xf32>
    %113 = vector.shape_cast %112 : vector<8x32xf32> to vector<1x8x32xf32>
    %c7_i32_37 = arith.constant 7 : i32
    %114 = arith.subi %c7_i32_37, %c2_i32 : i32
    %115 = arith.index_cast %114 : i32 to index
    %c0_38 = arith.constant 0 : index
    %c0_39 = arith.constant 0 : index
    %116 = vector.load %arg10[%115, %c0_38, %c0_39] : memref<8x8x32xf32, #tpu.memory_space<vmem>>, vector<1x8x32xf32>
    tpu.vector_store %arg10[%115, %c0_38, %c0_39], %113 {strides = array<i32>} : memref<8x8x32xf32, #tpu.memory_space<vmem>>, vector<1x8x32xf32>,
    %c3_i32 = arith.constant 3 : i32
    %c8_i32_40 = arith.constant 8 : i32
    %117 = arith.muli %c3_i32, %c8_i32_40 : i32
    %118 = tpu.assume_multiple %117, 8 : i32
    %119 = arith.index_cast %118 : i32 to index
    %c0_41 = arith.constant 0 : index
    %120 = vector.load %arg8[%119, %c0_41] : memref<64x192xf32, #tpu.memory_space<vmem>>, vector<8x192xf32>
    %cst_42 = arith.constant dense<0.000000e+00> : vector<8x192xf32>
    %121 = tpu.matmul %107, %7, %cst_42 {dimension_numbers = #tpu.dot_dimension_numbers<[1], [0], [0], [1], [0, 0, 1, 1], [], []>} : vector<8x64xf32>, vector<64x192xf32>, vector<8x192xf32> -> vector<8x192xf32>
    %122 = vector.extract_strided_slice %120 {offsets = [0, 0], sizes = [8, 128], strides = [1, 1]} : vector<8x192xf32> to vector<8x128xf32>
    %123 = vector.extract_strided_slice %121 {offsets = [0, 0], sizes = [8, 128], strides = [1, 1]} : vector<8x192xf32> to vector<8x128xf32>
    %124 = arith.addf %122, %123 : vector<8x128xf32>
    %125 = arith.negf %124 : vector<8x128xf32>
    %126 = math.exp %125 : vector<8x128xf32>
    %cst_43 = arith.constant 1.000000e+00 : f32
    %127 = vector.broadcast %cst_43 : f32 to vector<8x128xf32>
    %128 = arith.addf %127, %126 : vector<8x128xf32>
    %129 = arith.divf %127, %128 : vector<8x128xf32>
    %130 = vector.extract_strided_slice %129 {offsets = [0, 0], sizes = [8, 64], strides = [1, 1]} : vector<8x128xf32> to vector<8x64xf32>
    %131 = vector.extract_strided_slice %129 {offsets = [0, 64], sizes = [8, 64], strides = [1, 1]} : vector<8x128xf32> to vector<8x64xf32>
    %132 = vector.extract_strided_slice %120 {offsets = [0, 128], sizes = [8, 64], strides = [1, 1]} : vector<8x192xf32> to vector<8x64xf32>
    %133 = vector.extract_strided_slice %121 {offsets = [0, 128], sizes = [8, 64], strides = [1, 1]} : vector<8x192xf32> to vector<8x64xf32>
    %134 = arith.addf %133, %10 : vector<8x64xf32>
    %135 = arith.mulf %130, %134 : vector<8x64xf32>
    %136 = arith.addf %132, %135 : vector<8x64xf32>
    %137 = math.tanh %136 : vector<8x64xf32>
    %cst_44 = arith.constant 1.000000e+00 : f32
    %138 = vector.broadcast %cst_44 : f32 to vector<8x64xf32>
    %139 = arith.subf %138, %131 : vector<8x64xf32>
    %140 = arith.mulf %139, %137 : vector<8x64xf32>
    %141 = arith.mulf %131, %107 : vector<8x64xf32>
    %142 = arith.addf %140, %141 : vector<8x64xf32>
    %143 = vector.extract_strided_slice %142 {offsets = [0, 0], sizes = [8, 32], strides = [1, 1]} : vector<8x64xf32> to vector<8x32xf32>
    %144 = vector.shape_cast %143 : vector<8x32xf32> to vector<1x8x32xf32>
    %145 = arith.index_cast %c3_i32 : i32 to index
    %c0_45 = arith.constant 0 : index
    %c0_46 = arith.constant 0 : index
    %146 = vector.load %arg9[%145, %c0_45, %c0_46] : memref<8x8x32xf32, #tpu.memory_space<vmem>>, vector<1x8x32xf32>
    tpu.vector_store %arg9[%145, %c0_45, %c0_46], %144 {strides = array<i32>} : memref<8x8x32xf32, #tpu.memory_space<vmem>>, vector<1x8x32xf32>,
    %147 = vector.extract_strided_slice %142 {offsets = [0, 32], sizes = [8, 32], strides = [1, 1]} : vector<8x64xf32> to vector<8x32xf32>
    %148 = vector.shape_cast %147 : vector<8x32xf32> to vector<1x8x32xf32>
    %c7_i32_47 = arith.constant 7 : i32
    %149 = arith.subi %c7_i32_47, %c3_i32 : i32
    %150 = arith.index_cast %149 : i32 to index
    %c0_48 = arith.constant 0 : index
    %c0_49 = arith.constant 0 : index
    %151 = vector.load %arg10[%150, %c0_48, %c0_49] : memref<8x8x32xf32, #tpu.memory_space<vmem>>, vector<1x8x32xf32>
    tpu.vector_store %arg10[%150, %c0_48, %c0_49], %148 {strides = array<i32>} : memref<8x8x32xf32, #tpu.memory_space<vmem>>, vector<1x8x32xf32>,
    %c4_i32 = arith.constant 4 : i32
    %c8_i32_50 = arith.constant 8 : i32
    %152 = arith.muli %c4_i32, %c8_i32_50 : i32
    %153 = tpu.assume_multiple %152, 8 : i32
    %154 = arith.index_cast %153 : i32 to index
    %c0_51 = arith.constant 0 : index
    %155 = vector.load %arg8[%154, %c0_51] : memref<64x192xf32, #tpu.memory_space<vmem>>, vector<8x192xf32>
    %cst_52 = arith.constant dense<0.000000e+00> : vector<8x192xf32>
    %156 = tpu.matmul %142, %7, %cst_52 {dimension_numbers = #tpu.dot_dimension_numbers<[1], [0], [0], [1], [0, 0, 1, 1], [], []>} : vector<8x64xf32>, vector<64x192xf32>, vector<8x192xf32> -> vector<8x192xf32>
    %157 = vector.extract_strided_slice %155 {offsets = [0, 0], sizes = [8, 128], strides = [1, 1]} : vector<8x192xf32> to vector<8x128xf32>
    %158 = vector.extract_strided_slice %156 {offsets = [0, 0], sizes = [8, 128], strides = [1, 1]} : vector<8x192xf32> to vector<8x128xf32>
    %159 = arith.addf %157, %158 : vector<8x128xf32>
    %160 = arith.negf %159 : vector<8x128xf32>
    %161 = math.exp %160 : vector<8x128xf32>
    %cst_53 = arith.constant 1.000000e+00 : f32
    %162 = vector.broadcast %cst_53 : f32 to vector<8x128xf32>
    %163 = arith.addf %162, %161 : vector<8x128xf32>
    %164 = arith.divf %162, %163 : vector<8x128xf32>
    %165 = vector.extract_strided_slice %164 {offsets = [0, 0], sizes = [8, 64], strides = [1, 1]} : vector<8x128xf32> to vector<8x64xf32>
    %166 = vector.extract_strided_slice %164 {offsets = [0, 64], sizes = [8, 64], strides = [1, 1]} : vector<8x128xf32> to vector<8x64xf32>
    %167 = vector.extract_strided_slice %155 {offsets = [0, 128], sizes = [8, 64], strides = [1, 1]} : vector<8x192xf32> to vector<8x64xf32>
    %168 = vector.extract_strided_slice %156 {offsets = [0, 128], sizes = [8, 64], strides = [1, 1]} : vector<8x192xf32> to vector<8x64xf32>
    %169 = arith.addf %168, %10 : vector<8x64xf32>
    %170 = arith.mulf %165, %169 : vector<8x64xf32>
    %171 = arith.addf %167, %170 : vector<8x64xf32>
    %172 = math.tanh %171 : vector<8x64xf32>
    %cst_54 = arith.constant 1.000000e+00 : f32
    %173 = vector.broadcast %cst_54 : f32 to vector<8x64xf32>
    %174 = arith.subf %173, %166 : vector<8x64xf32>
    %175 = arith.mulf %174, %172 : vector<8x64xf32>
    %176 = arith.mulf %166, %142 : vector<8x64xf32>
    %177 = arith.addf %175, %176 : vector<8x64xf32>
    %178 = vector.extract_strided_slice %177 {offsets = [0, 0], sizes = [8, 32], strides = [1, 1]} : vector<8x64xf32> to vector<8x32xf32>
    %179 = vector.shape_cast %178 : vector<8x32xf32> to vector<1x8x32xf32>
    %180 = arith.index_cast %c4_i32 : i32 to index
    %c0_55 = arith.constant 0 : index
    %c0_56 = arith.constant 0 : index
    %181 = vector.load %arg9[%180, %c0_55, %c0_56] : memref<8x8x32xf32, #tpu.memory_space<vmem>>, vector<1x8x32xf32>
    tpu.vector_store %arg9[%180, %c0_55, %c0_56], %179 {strides = array<i32>} : memref<8x8x32xf32, #tpu.memory_space<vmem>>, vector<1x8x32xf32>,
    %182 = vector.extract_strided_slice %177 {offsets = [0, 32], sizes = [8, 32], strides = [1, 1]} : vector<8x64xf32> to vector<8x32xf32>
    %183 = vector.shape_cast %182 : vector<8x32xf32> to vector<1x8x32xf32>
    %c7_i32_57 = arith.constant 7 : i32
    %184 = arith.subi %c7_i32_57, %c4_i32 : i32
    %185 = arith.index_cast %184 : i32 to index
    %c0_58 = arith.constant 0 : index
    %c0_59 = arith.constant 0 : index
    %186 = vector.load %arg10[%185, %c0_58, %c0_59] : memref<8x8x32xf32, #tpu.memory_space<vmem>>, vector<1x8x32xf32>
    tpu.vector_store %arg10[%185, %c0_58, %c0_59], %183 {strides = array<i32>} : memref<8x8x32xf32, #tpu.memory_space<vmem>>, vector<1x8x32xf32>,
    %c5_i32 = arith.constant 5 : i32
    %c8_i32_60 = arith.constant 8 : i32
    %187 = arith.muli %c5_i32, %c8_i32_60 : i32
    %188 = tpu.assume_multiple %187, 8 : i32
    %189 = arith.index_cast %188 : i32 to index
    %c0_61 = arith.constant 0 : index
    %190 = vector.load %arg8[%189, %c0_61] : memref<64x192xf32, #tpu.memory_space<vmem>>, vector<8x192xf32>
    %cst_62 = arith.constant dense<0.000000e+00> : vector<8x192xf32>
    %191 = tpu.matmul %177, %7, %cst_62 {dimension_numbers = #tpu.dot_dimension_numbers<[1], [0], [0], [1], [0, 0, 1, 1], [], []>} : vector<8x64xf32>, vector<64x192xf32>, vector<8x192xf32> -> vector<8x192xf32>
    %192 = vector.extract_strided_slice %190 {offsets = [0, 0], sizes = [8, 128], strides = [1, 1]} : vector<8x192xf32> to vector<8x128xf32>
    %193 = vector.extract_strided_slice %191 {offsets = [0, 0], sizes = [8, 128], strides = [1, 1]} : vector<8x192xf32> to vector<8x128xf32>
    %194 = arith.addf %192, %193 : vector<8x128xf32>
    %195 = arith.negf %194 : vector<8x128xf32>
    %196 = math.exp %195 : vector<8x128xf32>
    %cst_63 = arith.constant 1.000000e+00 : f32
    %197 = vector.broadcast %cst_63 : f32 to vector<8x128xf32>
    %198 = arith.addf %197, %196 : vector<8x128xf32>
    %199 = arith.divf %197, %198 : vector<8x128xf32>
    %200 = vector.extract_strided_slice %199 {offsets = [0, 0], sizes = [8, 64], strides = [1, 1]} : vector<8x128xf32> to vector<8x64xf32>
    %201 = vector.extract_strided_slice %199 {offsets = [0, 64], sizes = [8, 64], strides = [1, 1]} : vector<8x128xf32> to vector<8x64xf32>
    %202 = vector.extract_strided_slice %190 {offsets = [0, 128], sizes = [8, 64], strides = [1, 1]} : vector<8x192xf32> to vector<8x64xf32>
    %203 = vector.extract_strided_slice %191 {offsets = [0, 128], sizes = [8, 64], strides = [1, 1]} : vector<8x192xf32> to vector<8x64xf32>
    %204 = arith.addf %203, %10 : vector<8x64xf32>
    %205 = arith.mulf %200, %204 : vector<8x64xf32>
    %206 = arith.addf %202, %205 : vector<8x64xf32>
    %207 = math.tanh %206 : vector<8x64xf32>
    %cst_64 = arith.constant 1.000000e+00 : f32
    %208 = vector.broadcast %cst_64 : f32 to vector<8x64xf32>
    %209 = arith.subf %208, %201 : vector<8x64xf32>
    %210 = arith.mulf %209, %207 : vector<8x64xf32>
    %211 = arith.mulf %201, %177 : vector<8x64xf32>
    %212 = arith.addf %210, %211 : vector<8x64xf32>
    %213 = vector.extract_strided_slice %212 {offsets = [0, 0], sizes = [8, 32], strides = [1, 1]} : vector<8x64xf32> to vector<8x32xf32>
    %214 = vector.shape_cast %213 : vector<8x32xf32> to vector<1x8x32xf32>
    %215 = arith.index_cast %c5_i32 : i32 to index
    %c0_65 = arith.constant 0 : index
    %c0_66 = arith.constant 0 : index
    %216 = vector.load %arg9[%215, %c0_65, %c0_66] : memref<8x8x32xf32, #tpu.memory_space<vmem>>, vector<1x8x32xf32>
    tpu.vector_store %arg9[%215, %c0_65, %c0_66], %214 {strides = array<i32>} : memref<8x8x32xf32, #tpu.memory_space<vmem>>, vector<1x8x32xf32>,
    %217 = vector.extract_strided_slice %212 {offsets = [0, 32], sizes = [8, 32], strides = [1, 1]} : vector<8x64xf32> to vector<8x32xf32>
    %218 = vector.shape_cast %217 : vector<8x32xf32> to vector<1x8x32xf32>
    %c7_i32_67 = arith.constant 7 : i32
    %219 = arith.subi %c7_i32_67, %c5_i32 : i32
    %220 = arith.index_cast %219 : i32 to index
    %c0_68 = arith.constant 0 : index
    %c0_69 = arith.constant 0 : index
    %221 = vector.load %arg10[%220, %c0_68, %c0_69] : memref<8x8x32xf32, #tpu.memory_space<vmem>>, vector<1x8x32xf32>
    tpu.vector_store %arg10[%220, %c0_68, %c0_69], %218 {strides = array<i32>} : memref<8x8x32xf32, #tpu.memory_space<vmem>>, vector<1x8x32xf32>,
    %c6_i32 = arith.constant 6 : i32
    %c8_i32_70 = arith.constant 8 : i32
    %222 = arith.muli %c6_i32, %c8_i32_70 : i32
    %223 = tpu.assume_multiple %222, 8 : i32
    %224 = arith.index_cast %223 : i32 to index
    %c0_71 = arith.constant 0 : index
    %225 = vector.load %arg8[%224, %c0_71] : memref<64x192xf32, #tpu.memory_space<vmem>>, vector<8x192xf32>
    %cst_72 = arith.constant dense<0.000000e+00> : vector<8x192xf32>
    %226 = tpu.matmul %212, %7, %cst_72 {dimension_numbers = #tpu.dot_dimension_numbers<[1], [0], [0], [1], [0, 0, 1, 1], [], []>} : vector<8x64xf32>, vector<64x192xf32>, vector<8x192xf32> -> vector<8x192xf32>
    %227 = vector.extract_strided_slice %225 {offsets = [0, 0], sizes = [8, 128], strides = [1, 1]} : vector<8x192xf32> to vector<8x128xf32>
    %228 = vector.extract_strided_slice %226 {offsets = [0, 0], sizes = [8, 128], strides = [1, 1]} : vector<8x192xf32> to vector<8x128xf32>
    %229 = arith.addf %227, %228 : vector<8x128xf32>
    %230 = arith.negf %229 : vector<8x128xf32>
    %231 = math.exp %230 : vector<8x128xf32>
    %cst_73 = arith.constant 1.000000e+00 : f32
    %232 = vector.broadcast %cst_73 : f32 to vector<8x128xf32>
    %233 = arith.addf %232, %231 : vector<8x128xf32>
    %234 = arith.divf %232, %233 : vector<8x128xf32>
    %235 = vector.extract_strided_slice %234 {offsets = [0, 0], sizes = [8, 64], strides = [1, 1]} : vector<8x128xf32> to vector<8x64xf32>
    %236 = vector.extract_strided_slice %234 {offsets = [0, 64], sizes = [8, 64], strides = [1, 1]} : vector<8x128xf32> to vector<8x64xf32>
    %237 = vector.extract_strided_slice %225 {offsets = [0, 128], sizes = [8, 64], strides = [1, 1]} : vector<8x192xf32> to vector<8x64xf32>
    %238 = vector.extract_strided_slice %226 {offsets = [0, 128], sizes = [8, 64], strides = [1, 1]} : vector<8x192xf32> to vector<8x64xf32>
    %239 = arith.addf %238, %10 : vector<8x64xf32>
    %240 = arith.mulf %235, %239 : vector<8x64xf32>
    %241 = arith.addf %237, %240 : vector<8x64xf32>
    %242 = math.tanh %241 : vector<8x64xf32>
    %cst_74 = arith.constant 1.000000e+00 : f32
    %243 = vector.broadcast %cst_74 : f32 to vector<8x64xf32>
    %244 = arith.subf %243, %236 : vector<8x64xf32>
    %245 = arith.mulf %244, %242 : vector<8x64xf32>
    %246 = arith.mulf %236, %212 : vector<8x64xf32>
    %247 = arith.addf %245, %246 : vector<8x64xf32>
    %248 = vector.extract_strided_slice %247 {offsets = [0, 0], sizes = [8, 32], strides = [1, 1]} : vector<8x64xf32> to vector<8x32xf32>
    %249 = vector.shape_cast %248 : vector<8x32xf32> to vector<1x8x32xf32>
    %250 = arith.index_cast %c6_i32 : i32 to index
    %c0_75 = arith.constant 0 : index
    %c0_76 = arith.constant 0 : index
    %251 = vector.load %arg9[%250, %c0_75, %c0_76] : memref<8x8x32xf32, #tpu.memory_space<vmem>>, vector<1x8x32xf32>
    tpu.vector_store %arg9[%250, %c0_75, %c0_76], %249 {strides = array<i32>} : memref<8x8x32xf32, #tpu.memory_space<vmem>>, vector<1x8x32xf32>,
    %252 = vector.extract_strided_slice %247 {offsets = [0, 32], sizes = [8, 32], strides = [1, 1]} : vector<8x64xf32> to vector<8x32xf32>
    %253 = vector.shape_cast %252 : vector<8x32xf32> to vector<1x8x32xf32>
    %c7_i32_77 = arith.constant 7 : i32
    %254 = arith.subi %c7_i32_77, %c6_i32 : i32
    %255 = arith.index_cast %254 : i32 to index
    %c0_78 = arith.constant 0 : index
    %c0_79 = arith.constant 0 : index
    %256 = vector.load %arg10[%255, %c0_78, %c0_79] : memref<8x8x32xf32, #tpu.memory_space<vmem>>, vector<1x8x32xf32>
    tpu.vector_store %arg10[%255, %c0_78, %c0_79], %253 {strides = array<i32>} : memref<8x8x32xf32, #tpu.memory_space<vmem>>, vector<1x8x32xf32>,
    %c7_i32_80 = arith.constant 7 : i32
    %c8_i32_81 = arith.constant 8 : i32
    %257 = arith.muli %c7_i32_80, %c8_i32_81 : i32
    %258 = tpu.assume_multiple %257, 8 : i32
    %259 = arith.index_cast %258 : i32 to index
    %c0_82 = arith.constant 0 : index
    %260 = vector.load %arg8[%259, %c0_82] : memref<64x192xf32, #tpu.memory_space<vmem>>, vector<8x192xf32>
    %cst_83 = arith.constant dense<0.000000e+00> : vector<8x192xf32>
    %261 = tpu.matmul %247, %7, %cst_83 {dimension_numbers = #tpu.dot_dimension_numbers<[1], [0], [0], [1], [0, 0, 1, 1], [], []>} : vector<8x64xf32>, vector<64x192xf32>, vector<8x192xf32> -> vector<8x192xf32>
    %262 = vector.extract_strided_slice %260 {offsets = [0, 0], sizes = [8, 128], strides = [1, 1]} : vector<8x192xf32> to vector<8x128xf32>
    %263 = vector.extract_strided_slice %261 {offsets = [0, 0], sizes = [8, 128], strides = [1, 1]} : vector<8x192xf32> to vector<8x128xf32>
    %264 = arith.addf %262, %263 : vector<8x128xf32>
    %265 = arith.negf %264 : vector<8x128xf32>
    %266 = math.exp %265 : vector<8x128xf32>
    %cst_84 = arith.constant 1.000000e+00 : f32
    %267 = vector.broadcast %cst_84 : f32 to vector<8x128xf32>
    %268 = arith.addf %267, %266 : vector<8x128xf32>
    %269 = arith.divf %267, %268 : vector<8x128xf32>
    %270 = vector.extract_strided_slice %269 {offsets = [0, 0], sizes = [8, 64], strides = [1, 1]} : vector<8x128xf32> to vector<8x64xf32>
    %271 = vector.extract_strided_slice %269 {offsets = [0, 64], sizes = [8, 64], strides = [1, 1]} : vector<8x128xf32> to vector<8x64xf32>
    %272 = vector.extract_strided_slice %260 {offsets = [0, 128], sizes = [8, 64], strides = [1, 1]} : vector<8x192xf32> to vector<8x64xf32>
    %273 = vector.extract_strided_slice %261 {offsets = [0, 128], sizes = [8, 64], strides = [1, 1]} : vector<8x192xf32> to vector<8x64xf32>
    %274 = arith.addf %273, %10 : vector<8x64xf32>
    %275 = arith.mulf %270, %274 : vector<8x64xf32>
    %276 = arith.addf %272, %275 : vector<8x64xf32>
    %277 = math.tanh %276 : vector<8x64xf32>
    %cst_85 = arith.constant 1.000000e+00 : f32
    %278 = vector.broadcast %cst_85 : f32 to vector<8x64xf32>
    %279 = arith.subf %278, %271 : vector<8x64xf32>
    %280 = arith.mulf %279, %277 : vector<8x64xf32>
    %281 = arith.mulf %271, %247 : vector<8x64xf32>
    %282 = arith.addf %280, %281 : vector<8x64xf32>
    %283 = vector.extract_strided_slice %282 {offsets = [0, 0], sizes = [8, 32], strides = [1, 1]} : vector<8x64xf32> to vector<8x32xf32>
    %284 = vector.shape_cast %283 : vector<8x32xf32> to vector<1x8x32xf32>
    %285 = arith.index_cast %c7_i32_80 : i32 to index
    %c0_86 = arith.constant 0 : index
    %c0_87 = arith.constant 0 : index
    %286 = vector.load %arg9[%285, %c0_86, %c0_87] : memref<8x8x32xf32, #tpu.memory_space<vmem>>, vector<1x8x32xf32>
    tpu.vector_store %arg9[%285, %c0_86, %c0_87], %284 {strides = array<i32>} : memref<8x8x32xf32, #tpu.memory_space<vmem>>, vector<1x8x32xf32>,
    %287 = vector.extract_strided_slice %282 {offsets = [0, 32], sizes = [8, 32], strides = [1, 1]} : vector<8x64xf32> to vector<8x32xf32>
    %288 = vector.shape_cast %287 : vector<8x32xf32> to vector<1x8x32xf32>
    %c7_i32_88 = arith.constant 7 : i32
    %289 = arith.subi %c7_i32_88, %c7_i32_80 : i32
    %290 = arith.index_cast %289 : i32 to index
    %c0_89 = arith.constant 0 : index
    %c0_90 = arith.constant 0 : index
    %291 = vector.load %arg10[%290, %c0_89, %c0_90] : memref<8x8x32xf32, #tpu.memory_space<vmem>>, vector<1x8x32xf32>
    tpu.vector_store %arg10[%290, %c0_89, %c0_90], %288 {strides = array<i32>} : memref<8x8x32xf32, #tpu.memory_space<vmem>>, vector<1x8x32xf32>,
    %c8_i32_91 = arith.constant 8 : i32
    %292 = vector.extract_strided_slice %282 {offsets = [0, 0], sizes = [8, 32], strides = [1, 1]} : vector<8x64xf32> to vector<8x32xf32>
    %c0_92 = arith.constant 0 : index
    %c0_93 = arith.constant 0 : index
    %c0_94 = arith.constant 0 : index
    %293 = vector.load %arg7[%c0_92, %c0_93, %c0_94] : memref<2x8x32xf32, #tpu.memory_space<vmem>>, vector<1x8x32xf32>
    %294 = vector.shape_cast %293 : vector<1x8x32xf32> to vector<8x32xf32>
    %295 = vector.shape_cast %292 : vector<8x32xf32> to vector<1x8x32xf32>
    tpu.vector_store %arg7[%c0_92, %c0_93, %c0_94], %295 {strides = array<i32>} : memref<2x8x32xf32, #tpu.memory_space<vmem>>, vector<1x8x32xf32>,
    %296 = vector.extract_strided_slice %282 {offsets = [0, 32], sizes = [8, 32], strides = [1, 1]} : vector<8x64xf32> to vector<8x32xf32>
    %c1 = arith.constant 1 : index
    %c0_95 = arith.constant 0 : index
    %c0_96 = arith.constant 0 : index
    %297 = vector.load %arg7[%c1, %c0_95, %c0_96] : memref<2x8x32xf32, #tpu.memory_space<vmem>>, vector<1x8x32xf32>
    %298 = vector.shape_cast %297 : vector<1x8x32xf32> to vector<8x32xf32>
    %299 = vector.shape_cast %296 : vector<8x32xf32> to vector<1x8x32xf32>
    tpu.vector_store %arg7[%c1, %c0_95, %c0_96], %299 {strides = array<i32>} : memref<2x8x32xf32, #tpu.memory_space<vmem>>, vector<1x8x32xf32>,
    %c0_97 = arith.constant 0 : index
    %c0_98 = arith.constant 0 : index
    %c0_99 = arith.constant 0 : index
    %300 = vector.load %arg9[%c0_97, %c0_98, %c0_99] : memref<8x8x32xf32, #tpu.memory_space<vmem>>, vector<8x8x32xf32>
    %c0_100 = arith.constant 0 : index
    %c0_101 = arith.constant 0 : index
    %c0_102 = arith.constant 0 : index
    %301 = vector.load %arg10[%c0_100, %c0_101, %c0_102] : memref<8x8x32xf32, #tpu.memory_space<vmem>>, vector<8x8x32xf32>
    %302 = arith.addf %300, %301 : vector<8x8x32xf32>
    %c0_103 = arith.constant 0 : index
    %c0_104 = arith.constant 0 : index
    %c0_105 = arith.constant 0 : index
    %303 = vector.load %arg6[%c0_103, %c0_104, %c0_105] : memref<8x8x32xf32, #tpu.memory_space<vmem>>, vector<8x8x32xf32>
    tpu.vector_store %arg6[%c0_103, %c0_104, %c0_105], %302 {strides = array<i32>} : memref<8x8x32xf32, #tpu.memory_space<vmem>>, vector<8x8x32xf32>,
    return
  }
  func.func @transform_0(%arg0: i32) -> (i32, i32) {
    %c0_i32 = arith.constant 0 : i32
    %c0_i32_0 = arith.constant 0 : i32
    %c0_i32_1 = arith.constant 0 : i32
    return %c0_i32, %c0_i32_0 : i32, i32
  }
  func.func @transform_1(%arg0: i32) -> (i32, i32) {
    %c0_i32 = arith.constant 0 : i32
    %c0_i32_0 = arith.constant 0 : i32
    %c0_i32_1 = arith.constant 0 : i32
    return %c0_i32, %c0_i32_0 : i32, i32
  }
  func.func @transform_2(%arg0: i32) -> (i32, i32) {
    %c0_i32 = arith.constant 0 : i32
    %c0_i32_0 = arith.constant 0 : i32
    %c0_i32_1 = arith.constant 0 : i32
    return %c0_i32, %c0_i32_0 : i32, i32
  }
  func.func @transform_3(%arg0: i32) -> (i32, i32) {
    %c0_i32 = arith.constant 0 : i32
    %c0_i32_0 = arith.constant 0 : i32
    %c0_i32_1 = arith.constant 0 : i32
    return %c0_i32, %c0_i32_0 : i32, i32
  }
  func.func @transform_4(%arg0: i32) -> (i32, i32) {
    %c0_i32 = arith.constant 0 : i32
    %c0_i32_0 = arith.constant 0 : i32
    %c0_i32_1 = arith.constant 0 : i32
    return %c0_i32, %c0_i32_0 : i32, i32
  }
  func.func @transform_5(%arg0: i32) -> (i32, i32, i32) {
    %c0_i32 = arith.constant 0 : i32
    %c0_i32_0 = arith.constant 0 : i32
    %c0_i32_1 = arith.constant 0 : i32
    %c0_i32_2 = arith.constant 0 : i32
    return %c0_i32, %c0_i32_0, %c0_i32_1 : i32, i32, i32
  }
  func.func @transform_6(%arg0: i32) -> (i32, i32, i32) {
    %c0_i32 = arith.constant 0 : i32
    %c0_i32_0 = arith.constant 0 : i32
    %c0_i32_1 = arith.constant 0 : i32
    %c0_i32_2 = arith.constant 0 : i32
    return %c0_i32, %c0_i32_0, %c0_i32_1 : i32, i32, i32
  }
}

</mosaic_0001>

<bundles_post_ra>
// kernel: luong_attn_encoder_forward.1
= control target key start
LH: loop header
LB: loop body
LE: loop exit
PB: predicated region body
PF: predicated region fallthrough
CT: control target
= control target key end

     0   :  { %12 = vsyncpa [#allocation6], 0  ;;  %v1430_v7 = vmov 0.0   ;;  %vm52_vm0 = vcmask 261120   ;;  %s1838_s0 = inlined_call_operand.vmem [shape: f32[64,32], index: 0, kind: input, shape index: {}]   ;;  %s1839_s1 = inlined_call_operand.vmem [shape: f32[32,192], index: 1, kind: input, shape index: {}]   ;;  %s1840_s2 = inlined_call_operand.vmem [shape: f32[1,192], index: 2, kind: input, shape index: {}]   ;;  %s1841_s3 = inlined_call_operand.vmem [shape: f32[64,192], index: 3, kind: input, shape index: {}]   ;;  %s1842_s4 = inlined_call_operand.vmem [shape: f32[1,64], index: 4, kind: input, shape index: {}]   ;;  %s1843_s5 = inlined_call_operand.hbm [shape: f32[8,8,32], index: 5, kind: output, shape index: {0}]   ;;  %s1844_s6 = inlined_call_operand.hbm [shape: f32[2,8,32], index: 6, kind: output, shape index: {1}]  }
   0x1   :  { %v33_v0 = vld [vmem:[%s1839_s1 + $0x8] sm:$0xff]  ;;  %v35_v1 = vld [vmem:[%s1839_s1 + $0x18] sm:$0xff]  ;;  %v32_v2 = vld [vmem:[%s1839_s1] sm:$0xff]  ;;  %141 = vmatprep.mubr.f32.mxu0 %v1430_v7  ;;  %302 = vmatprep.mubr.f32.mxu1 %v1430_v7 }
   0x2   :  { %v1191_v3 = vpack.c.bf16 %v35_v1, %v33_v0  ;;  %v34_v4 = vld [vmem:[%s1839_s1 + $0x10] sm:$0xff]  ;;  %v208_v5 = vld [vmem:[%s1841_s3 + $0x8] sm:$0xff]  ;;  %v210_v6 = vld [vmem:[%s1841_s3 + $0x18] sm:$0xff] }
   0x3   :  { %v1193_v8 = vpack.c.bf16 %v34_v4, %v32_v2  ;;  %v1492_v9 = vpack.c.bf16 %v210_v6, %v208_v5  ;;  %v207_v10 = vld [vmem:[%s1841_s3] sm:$0xff]  ;;  %v209_v11 = vld [vmem:[%s1841_s3 + $0x10] sm:$0xff]  ;;  %v37_v12 = vld [vmem:[%s1839_s1 + $0x28] sm:$0xff] }
   0x4   :  { %1192 = vmatprep.subr.bf16.mxu0 %v1191_v3  ;;  %v1503_v13 = vpack.c.bf16 %v209_v11, %v207_v10  ;;  %v39_v14 = vld [vmem:[%s1839_s1 + $0x38] sm:$0xff]  ;;  %v36_v15 = vld [vmem:[%s1839_s1 + $0x20] sm:$0xff]  ;;  %v38_v16 = vld [vmem:[%s1839_s1 + $0x30] sm:$0xff] }
   0x5   :  { %1194 = vmatpush1.bf16.msra.mxu0 %v1193_v8  ;;  %1200 = vmatprep.subr.bf16.mxu1 %v1492_v9  ;;  %v1195_v17 = vpack.c.bf16 %v39_v14, %v37_v12  ;;  %v1197_v18 = vpack.c.bf16 %v38_v16, %v36_v15  ;;  %v212_v19 = vld [vmem:[%s1841_s3 + $0x28] sm:$0xff]  ;;  %v214_v20 = vld [vmem:[%s1841_s3 + $0x38] sm:$0xff]  ;;  %v211_v21 = vld [vmem:[%s1841_s3 + $0x20] sm:$0xff] }
   0x6   :  { %1202 = vmatpush1.bf16.msra.mxu1 %v1503_v13  ;;  %v1525_v22 = vpack.c.bf16 %v214_v20, %v212_v19  ;;  %v213_v23 = vld [vmem:[%s1841_s3 + $0x30] sm:$0xff]  ;;  %v216_v24 = vld [vmem:[%s1841_s3 + $0x48] sm:$0xff]  ;;  %v218_v26 = vld [vmem:[%s1841_s3 + $0x58] sm:$0xff] }
   0x7   :  { %1196 = vmatprep.subr.bf16.mxu0 %v1195_v17  ;;  %v1533_v25 = vpack.c.bf16 %v213_v23, %v211_v21  ;;  %v215_v27 = vld [vmem:[%s1841_s3 + $0x40] sm:$0xff]  ;;  %v217_v28 = vld [vmem:[%s1841_s3 + $0x50] sm:$0xff]  ;;  %v1545_v29 = vpack.c.bf16 %v218_v26, %v216_v24  ;;  %v220_v30 = vld [vmem:[%s1841_s3 + $0x68] sm:$0xff] }
   0x8   :  { %1204 = vmatprep.subr.bf16.mxu1 %v1525_v22  ;;  %v222_v31 = vld [vmem:[%s1841_s3 + $0x78] sm:$0xff]  ;;  %v24_v32 = vld [vmem:[%s1838_s0] sm:$0xff] }
   0x9   :  { %1198 = vmatpush1.bf16.msra.mxu0 %v1197_v18 }
   0xa   :  { %13 = vsyncpa [#allocation8], 0  ;;  %1206 = vmatpush1.bf16.msra.mxu1 %v1533_v25  ;;  %v1557_v33 = vpack.c.bf16 %v217_v28, %v215_v27  ;;  %1232 = vmatprep.subr.bf16.mxu0 %v1492_v9  ;;  %v1561_v34 = vpack.c.bf16 %v222_v31, %v220_v30  ;;  %v219_v35 = vld [vmem:[%s1841_s3 + $0x60] sm:$0xff]  ;;  %v221_v36 = vld [vmem:[%s1841_s3 + $0x70] sm:$0xff]  ;;  %v42_v38 = vlaneseq  ;;  %vm191_vm1 = vcmask 523264   ;;  %s1431_s26 = smov 64  }
   0xb   :  { %1208 = vmatprep.subr.bf16.mxu1 %v1545_v29  ;;  %v1573_v37 = vpack.c.bf16 %v221_v36, %v219_v35  ;;  %v40_v41 = vld [vmem:[%s1840_s2] sm:$0x3]  ;;  %v25_v61 = vld [vmem:[%s1838_s0 + $0x8] sm:$0xff]  ;;  %v26_v24 = vld [vmem:[%s1838_s0 + $0x10] sm:$0xff]  ;;  %s1433_s13 = smov [#allocation7]  }
   0xc   :  { %1167 = vmatmul.mubr.msk.f32.vlgmr.msra.gmra.mrb[0].mxu0 %vm52_vm0, %v24_v32  ;;  %v43_v39 = vshrl.u32 %v42_v38, 7  ;;  %v1608_v55 = vld [vmem:[%s1842_s4] ss:$0 sm:$0xff]  ;;  %v27_v26 = vld [vmem:[%s1838_s0 + $0x18] sm:$0xff]  ;;  %v29_v30 = vld [vmem:[%s1838_s0 + $0x28] sm:$0xff]  ;;  %s1145_s14 = sshll.u32 %s1433_s13, 4  ;;  %s1146_s14 = int_to_ptr.vmem [resolvable:$true] %s1145_s14 }
   0xd   :  { %147 = vmatprep.mubr.f32.mxu0 %v1430_v7  ;;  %1234 = vmatpush1.bf16.msra.mxu0 %v1503_v13  ;;  %v28_v27 = vld [vmem:[%s1838_s0 + $0x20] sm:$0xff]  ;;  %v30_v31 = vld [vmem:[%s1838_s0 + $0x30] sm:$0xff]  ;;  %v31_v32 = vld [vmem:[%s1838_s0 + $0x38] sm:$0xff]  ;;  %s1432_s0 = smov 32   ;;  %s1382_s15 = scalar_lea.vmem %s1146_s14, 256 }
   0xe   :  { %1210 = vmatpush1.bf16.msra.mxu1 %v1557_v33  ;;  %1236 = vmatprep.subr.bf16.mxu0 %v1525_v22  ;;  %v44_v40 = vsub.s32 0, %v43_v39  ;;  %v48_v42 = vsub.s32 1, %v43_v39  ;;  %p1383_p0 = scmp.ne.s32.totalorder %s1146_s14, %s1382_s15  ;;  %p1387_p1 = scmp.lt.s32.totalorder %s1146_s14, %s1146_s14 }
   0xf   :  { %1212 = vmatprep.subr.bf16.mxu1 %v1561_v34  ;;  %p1388_p2 = scmp.lt.s32.totalorder %s1382_s15, %s1382_s15 }
  0x10   :  { %v1598_v43 = vrot.slane %v40_v41, %v44_v40  ;;  %v1600_v44 = vrot.slane %v40_v41, %v48_v42  ;;  %1168 = vmatmul.mubr.msk.f32.gmra.mrb[2].mxu0 %vm52_vm0, %v25_v61 }
  0x11   :  { %1238 = vmatpush1.bf16.msra.mxu0 %v1533_v25  ;;  %153 = vmatprep.mubr.f32.mxu0 %v1430_v7  ;;  %p1389_p3 = por %p1388_p2, %p1387_p1 }
  0x12   :  { %1214 = vmatpush1.bf16.msra.mxu1 %v1573_v37  ;;  %1240 = vmatprep.subr.bf16.mxu0 %v1545_v29 }
  0x13   :  { %1216 = vmatprep.subr.bf16.mxu1 %v1492_v9  ;;  %p1390_p4 = pnand %p1389_p3, %p1383_p0 }
  0x14   :  { %1169 = vmatmul.mubr.msk.f32.gmra.mrb[4].mxu0 %vm52_vm0, %v26_v24 }
  0x15   :  { %303 = vmatmul.mubr.f32.vlgmr.msra.gmra.mrb[0].mxu1 %v1430_v7  ;;  %1242 = vmatpush1.bf16.msra.mxu0 %v1557_v33 }
  0x16   :  { %1218 = vmatpush1.bf16.msra.mxu1 %v1503_v13  ;;  %409 = vmatprep.mubr.f32.mxu1 %v1430_v7 }
  0x17   :  { %1220 = vmatprep.subr.bf16.mxu1 %v1525_v22  ;;  %1244 = vmatprep.subr.bf16.mxu0 %v1561_v34 }
  0x18   :  { %159 = vmatprep.mubr.f32.mxu0 %v1430_v7 }
  0x19   :  { %1246 = vmatpush1.bf16.msra.mxu0 %v1573_v37 }
  0x1a   :  { %1222 = vmatpush1.bf16.msra.mxu1 %v1533_v25  ;;  %1264 = vmatprep.subr.bf16.mxu0 %v1492_v9 }
  0x1b   :  { %1224 = vmatprep.subr.bf16.mxu1 %v1545_v29  ;;  %1170 = vmatmul.mubr.msk.f32.gmra.mrb[6].mxu0 %vm52_vm0, %v27_v26 }
  0x1c   :  { %165 = vmatprep.mubr.f32.mxu0 %v1430_v7 }
  0x1e   :  { %1226 = vmatpush1.bf16.msra.mxu1 %v1557_v33 }
  0x1f   :  { %1228 = vmatprep.subr.bf16.mxu1 %v1561_v34  ;;  %1171 = vmatmul.mubr.msk.f32.gmra.mrb[8].mxu0 %vm52_vm0, %v28_v27 }
  0x20   :  { %171 = vmatprep.mubr.f32.mxu0 %v1430_v7 }
  0x22   :  { %1230 = vmatpush1.bf16.msra.mxu1 %v1573_v37 }
  0x23   :  { %1248 = vmatprep.subr.bf16.mxu1 %v1492_v9  ;;  %1172 = vmatmul.mubr.msk.f32.gmra.mrb[10].mxu0 %vm52_vm0, %v29_v30 }
  0x24   :  { %177 = vmatprep.mubr.f32.mxu0 %v1430_v7 }
  0x27   :  { %1173 = vmatmul.mubr.msk.f32.gmra.mrb[12].mxu0 %vm52_vm0, %v30_v31 }
  0x28   :  { %183 = vmatprep.mubr.f32.mxu0 %v1430_v7 }
  0x2b   :  { %1174 = vmatmul.mubr.msk.f32.gmra.mrb[14].mxu0 %vm52_vm0, %v31_v32 }
  0x2c   :  { %517 = vmatprep.mubr.f32.mxu0 %v1430_v7 }
  0xdf   :  { %v143_v45 = vpop.f32.mrb[0].mxu0 }
  0xe0   :  { %v144_v46 = vadd.f32 %v143_v45, %v1598_v43  ;;  %v145_v47 = vpop.f32.mrb[1].mxu0 }
  0xe1   :  { %v146_v48 = vadd.f32 %v145_v47, %v1600_v44 }
  0xe3   :  { %192 = vst.msk [vmem:[#allocation2 + $0x8] sm:$0xff] %vm191_vm1, %v146_v48  ;;  %v149_v4 = vpop.f32.mrb[2].mxu0 }
  0xe4   :  { %v150_v5 = vadd.f32 %v149_v4, %v1598_v43  ;;  %v151_v6 = vpop.f32.mrb[3].mxu0 }
  0xe5   :  { %v152_v8 = vadd.f32 %v151_v6, %v1600_v44 }
  0xe7   :  { %194 = vst.msk [vmem:[#allocation2 + $0x18] sm:$0xff] %vm191_vm1, %v152_v8  ;;  %v155_v41 = vpop.f32.mrb[4].mxu0 }
  0xe8   :  { %v304_v49 = vpop.f32.mrb[0].mxu1  ;;  %v156_v42 = vadd.f32 %v155_v41, %v1598_v43  ;;  %v157_v45 = vpop.f32.mrb[5].mxu0 }
  0xe9   :  { %v309_v50 = vadd.f32 %v304_v49, %v144_v46  ;;  %v306_v51 = vpop.f32.mrb[1].mxu1  ;;  %v158_v46 = vadd.f32 %v157_v45, %v1600_v44 }
  0xea   :  { %v316_v56 = vadd.f32 %v1608_v55, %v306_v51  ;;  %v234_v59 = vld [vmem:[#allocation2 + $0x8] sm:$0xff] }
  0xeb   :  { %v1176_v52 = vmul.f32 -1.442695, %v309_v50  ;;  %196 = vst.msk [vmem:[#allocation2 + $0x28] sm:$0xff] %vm191_vm1, %v158_v46 }
  0xed   :  { %1334 = vpow2.f32 %v1176_v52 }
  0xee   :  { %v342_v21 = vld [vmem:[#allocation2 + $0x18] sm:$0xff]  ;;  %v161_v47 = vpop.f32.mrb[6].mxu0 }
  0xef   :  { %v1676_v48 = vadd.f32 %v161_v47, %v1598_v43  ;;  %v163_v49 = vpop.f32.mrb[7].mxu0 }
  0xf0   :  { %v164_v50 = vadd.f32 %v163_v49, %v1600_v44 }
  0xf2   :  { %198 = vst.msk [vmem:[#allocation2 + $0x38] sm:$0xff] %vm191_vm1, %v164_v50  ;;  %v167_v51 = vpop.f32.mrb[8].mxu0 }
  0xf3   :  { %v1681_v52 = vadd.f32 %v167_v51, %v1598_v43 }
  0xf7   :  { %v1335_v53 = vpop.eup %1334 }
  0xf8   :  { %v313_v54 = vadd.f32 1.0, %v1335_v53  ;;  %v169_v53 = vpop.f32.mrb[9].mxu0 }
  0xf9   :  { %v558_v41 = vld [vmem:[#allocation2 + $0x38] sm:$0xff] }
  0xfa   :  { %1336 = vrcp.f32 %v313_v54  ;;  %v170_v54 = vadd.f32 %v169_v53, %v1600_v44 }
  0xfc   :  { %200 = vst.msk [vmem:[#allocation2 + $0x48] sm:$0xff] %vm191_vm1, %v170_v54 }
 0x104   :  { %v1337_v57 = vpop.eup %1336 }
 0x105   :  { %v317_v58 = vmul.f32 %v1337_v57, %v316_v56  ;;  %v320_v63 = vsub.f32 1.0, %v1337_v57  ;;  %v326_v1 = vmul.f32 0.0, %v1337_v57  ;;  %v173_v56 = vpop.f32.mrb[10].mxu0 }
 0x106   :  { %v1686_v57 = vadd.f32 %v173_v56, %v1598_v43 }
 0x107   :  { %v318_v60 = vadd.f32 %v317_v58, %v234_v59  ;;  %v175_v58 = vpop.f32.mrb[11].mxu0 }
 0x108   :  { %v176_v59 = vadd.f32 %v175_v58, %v1600_v44 }
 0x109   :  { %1338 = vtanh.f32 %v318_v60  ;;  %v179_v60 = vpop.f32.mrb[12].mxu0 }
 0x10a   :  { %202 = vst.msk [vmem:[#allocation2 + $0x58] sm:$0xff] %vm191_vm1, %v176_v59  ;;  %v1691_v61 = vadd.f32 %v179_v60, %v1598_v43 }
 0x113   :  { %v1339_v62 = vpop.eup %1338 }
 0x114   :  { %322 = vrot.lane.b32.xlu0 %v1339_v62, %s1431_s26  ;;  %v181_v62 = vpop.f32.mrb[13].mxu0 }
 0x186   :  { %v323_v0 = vpop.permute.xlu0 %322 }
 0x187   :  { %v325_v2 = vmul.f32 %v323_v0, %v320_v63  ;;  %v182_v63 = vadd.f32 %v181_v62, %v1600_v44  ;;  %v185_v0 = vpop.f32.mrb[14].mxu0 }
 0x189   :  { %v1617_v3 = vadd.f32 %v326_v1, %v325_v2  ;;  %204 = vst.msk [vmem:[#allocation2 + $0x68] sm:$0xff] %vm191_vm1, %v182_v63  ;;  %v1696_v1 = vadd.f32 %v185_v0, %v1598_v43  ;;  %v187_v2 = vpop.f32.mrb[15].mxu0  ;;  %v666_v0 = vld [vmem:[#allocation2 + $0x48] sm:$0xff] }
 0x18a   :  { %v188_v4 = vadd.f32 %v187_v2, %v1600_v44 }
 0x18b   :  { %329 = vrot.lane.b32.xlu0 %v1617_v3, %s1431_s26 }
 0x18c   :  { %206 = vst.msk [vmem:[#allocation2 + $0x78] sm:$0xff] %vm191_vm1, %v188_v4 }
 0x1fd   :  { %v330_v10 = vpop.permute.xlu0 %329 }
 0x1fe   :  { %332 = vst.msk [vmem:[#allocation3] sm:$0xff] %vm52_vm0, %v330_v10  ;;  %1177 = vmatmul.mubr.msk.f32.vlgmr.msra.gmra.mrb[2].mxu1 %vm191_vm1, %v330_v10 }
 0x1ff   :  { %1250 = vmatpush1.bf16.msra.mxu1 %v1503_v13  ;;  %625 = vmatprep.mubr.f32.mxu1 %v1430_v7 }
 0x200   :  { %1252 = vmatprep.subr.bf16.mxu1 %v1525_v22 }
 0x203   :  { %1254 = vmatpush1.bf16.msra.mxu1 %v1533_v25 }
 0x204   :  { %1256 = vmatprep.subr.bf16.mxu1 %v1545_v29 }
 0x207   :  { %1258 = vmatpush1.bf16.msra.mxu1 %v1557_v33 }
 0x208   :  { %1260 = vmatprep.subr.bf16.mxu1 %v1561_v34 }
 0x20b   :  { %1262 = vmatpush1.bf16.msra.mxu1 %v1573_v37 }
 0x20c   :  { %1280 = vmatprep.subr.bf16.mxu1 %v1492_v9 }
 0x2d1   :  { %v411_v11 = vpop.f32.mrb[2].mxu1 }
 0x2d2   :  { %v416_v12 = vadd.f32 %v411_v11, %v150_v5  ;;  %v413_v14 = vpop.f32.mrb[3].mxu1 }
 0x2d3   :  { %v423_v18 = vadd.f32 %v1608_v55, %v413_v14 }
 0x2d4   :  { %v1178_v15 = vmul.f32 -1.442695, %v416_v12 }
 0x2d6   :  { %1340 = vpow2.f32 %v1178_v15 }
 0x2e0   :  { %v1341_v16 = vpop.eup %1340 }
 0x2e1   :  { %v420_v17 = vadd.f32 1.0, %v1341_v16  ;;  %v450_v16 = vld [vmem:[#allocation2 + $0x28] sm:$0xff] }
 0x2e3   :  { %1342 = vrcp.f32 %v420_v17 }
 0x2ed   :  { %v1343_v19 = vpop.eup %1342 }
 0x2ee   :  { %v424_v20 = vmul.f32 %v1343_v19, %v423_v18  ;;  %v427_v35 = vsub.f32 1.0, %v1343_v19  ;;  %v433_v38 = vmul.f32 %v1343_v19, %v1617_v3 }
 0x2f0   :  { %v425_v23 = vadd.f32 %v424_v20, %v342_v21 }
 0x2f2   :  { %1344 = vtanh.f32 %v425_v23 }
 0x2fc   :  { %v1345_v28 = vpop.eup %1344 }
 0x2fd   :  { %429 = vrot.lane.b32.xlu1 %v1345_v28, %s1431_s26 }
 0x36f   :  { %v430_v36 = vpop.permute.xlu1 %429 }
 0x370   :  { %v432_v39 = vmul.f32 %v430_v36, %v427_v35 }
 0x372   :  { %v1668_v40 = vadd.f32 %v433_v38, %v432_v39 }
 0x374   :  { %436 = vrot.lane.b32.xlu1 %v1668_v40, %s1431_s26 }
 0x3e6   :  { %v437_v5 = vpop.permute.xlu1 %436 }
 0x3e7   :  { %440 = vst.msk [vmem:[#allocation3 + $0x8] sm:$0xff] %vm52_vm0, %v437_v5  ;;  %1179 = vmatmul.mubr.msk.f32.vlgmr.msra.gmra.mrb[16].mxu0 %vm191_vm1, %v437_v5 }
 0x3e8   :  { %1266 = vmatpush1.bf16.msra.mxu0 %v1503_v13  ;;  %733 = vmatprep.mubr.f32.mxu0 %v1430_v7 }
 0x3e9   :  { %1268 = vmatprep.subr.bf16.mxu0 %v1525_v22 }
 0x3ec   :  { %1270 = vmatpush1.bf16.msra.mxu0 %v1533_v25 }
 0x3ed   :  { %1272 = vmatprep.subr.bf16.mxu0 %v1545_v29 }
 0x3f0   :  { %1274 = vmatpush1.bf16.msra.mxu0 %v1557_v33 }
 0x3f1   :  { %1276 = vmatprep.subr.bf16.mxu0 %v1561_v34 }
 0x3f4   :  { %1278 = vmatpush1.bf16.msra.mxu0 %v1573_v37 }
 0x3f5   :  { %1296 = vmatprep.subr.bf16.mxu0 %v1492_v9 }
 0x4ba   :  { %v519_v43 = vpop.f32.mrb[16].mxu0 }
 0x4bb   :  { %v524_v44 = vadd.f32 %v519_v43, %v156_v42  ;;  %v521_v6 = vpop.f32.mrb[17].mxu0 }
 0x4bc   :  { %v531_v12 = vadd.f32 %v1608_v55, %v521_v6 }
 0x4bd   :  { %v1180_v8 = vmul.f32 -1.442695, %v524_v44 }
 0x4bf   :  { %1346 = vpow2.f32 %v1180_v8 }
 0x4c9   :  { %v1347_v10 = vpop.eup %1346 }
 0x4ca   :  { %v528_v11 = vadd.f32 1.0, %v1347_v10 }
 0x4cc   :  { %1348 = vrcp.f32 %v528_v11 }
 0x4d6   :  { %v1349_v14 = vpop.eup %1348 }
 0x4d7   :  { %v532_v15 = vmul.f32 %v1349_v14, %v531_v12  ;;  %v535_v19 = vsub.f32 1.0, %v1349_v14  ;;  %v541_v21 = vmul.f32 %v1349_v14, %v1668_v40 }
 0x4d9   :  { %v533_v17 = vadd.f32 %v532_v15, %v450_v16 }
 0x4db   :  { %1350 = vtanh.f32 %v533_v17 }
 0x4e5   :  { %v1351_v18 = vpop.eup %1350 }
 0x4e6   :  { %537 = vrot.lane.b32.xlu0 %v1351_v18, %s1431_s26 }
 0x558   :  { %v538_v20 = vpop.permute.xlu0 %537 }
 0x559   :  { %v540_v23 = vmul.f32 %v538_v20, %v535_v19 }
 0x55b   :  { %v1714_v24 = vadd.f32 %v541_v21, %v540_v23 }
 0x55d   :  { %544 = vrot.lane.b32.xlu1 %v1714_v24, %s1431_s26 }
 0x5cf   :  { %v545_v26 = vpop.permute.xlu1 %544 }
 0x5d0   :  { %548 = vst.msk [vmem:[#allocation3 + $0x10] sm:$0xff] %vm52_vm0, %v545_v26  ;;  %1181 = vmatmul.mubr.msk.f32.vlgmr.msra.gmra.mrb[4].mxu1 %vm191_vm1, %v545_v26 }
 0x5d1   :  { %1282 = vmatpush1.bf16.msra.mxu1 %v1503_v13  ;;  %841 = vmatprep.mubr.f32.mxu1 %v1430_v7 }
 0x5d2   :  { %1284 = vmatprep.subr.bf16.mxu1 %v1525_v22 }
 0x5d5   :  { %1286 = vmatpush1.bf16.msra.mxu1 %v1533_v25 }
 0x5d6   :  { %1288 = vmatprep.subr.bf16.mxu1 %v1545_v29 }
 0x5d9   :  { %1290 = vmatpush1.bf16.msra.mxu1 %v1557_v33 }
 0x5da   :  { %1292 = vmatprep.subr.bf16.mxu1 %v1561_v34 }
 0x5dd   :  { %1294 = vmatpush1.bf16.msra.mxu1 %v1573_v37 }
 0x5de   :  { %1312 = vmatprep.subr.bf16.mxu1 %v1492_v9 }
 0x6a3   :  { %v627_v27 = vpop.f32.mrb[4].mxu1 }
 0x6a4   :  { %v632_v28 = vadd.f32 %v627_v27, %v1676_v48  ;;  %v629_v30 = vpop.f32.mrb[5].mxu1 }
 0x6a5   :  { %v639_v36 = vadd.f32 %v1608_v55, %v629_v30 }
 0x6a6   :  { %v1182_v31 = vmul.f32 -1.442695, %v632_v28 }
 0x6a8   :  { %1352 = vpow2.f32 %v1182_v31 }
 0x6b2   :  { %v1353_v32 = vpop.eup %1352 }
 0x6b3   :  { %v636_v35 = vadd.f32 1.0, %v1353_v32 }
 0x6b5   :  { %1354 = vrcp.f32 %v636_v35  ;;  %v882_v35 = vld [vmem:[#allocation2 + $0x68] sm:$0xff] }
 0x6bf   :  { %v1355_v38 = vpop.eup %1354 }
 0x6c0   :  { %v640_v39 = vmul.f32 %v1355_v38, %v639_v36  ;;  %v643_v9 = vsub.f32 1.0, %v1355_v38  ;;  %v649_v47 = vmul.f32 %v1355_v38, %v1714_v24 }
 0x6c2   :  { %v641_v42 = vadd.f32 %v640_v39, %v558_v41 }
 0x6c4   :  { %1356 = vtanh.f32 %v641_v42 }
 0x6ce   :  { %v1357_v45 = vpop.eup %1356 }
 0x6cf   :  { %645 = vrot.lane.b32.xlu0 %v1357_v45, %s1431_s26 }
 0x741   :  { %v646_v46 = vpop.permute.xlu0 %645 }
 0x742   :  { %v648_v48 = vmul.f32 %v646_v46, %v643_v9 }
 0x744   :  { %v1733_v49 = vadd.f32 %v649_v47, %v648_v48 }
 0x746   :  { %652 = vrot.lane.b32.xlu1 %v1733_v49, %s1431_s26 }
 0x7b8   :  { %v653_v50 = vpop.permute.xlu1 %652 }
 0x7b9   :  { %656 = vst.msk [vmem:[#allocation3 + $0x18] sm:$0xff] %vm52_vm0, %v653_v50  ;;  %1183 = vmatmul.mubr.msk.f32.vlgmr.msra.gmra.mrb[18].mxu0 %vm191_vm1, %v653_v50 }
 0x7ba   :  { %1298 = vmatpush1.bf16.msra.mxu0 %v1503_v13  ;;  %949 = vmatprep.mubr.f32.mxu0 %v1430_v7 }
 0x7bb   :  { %1300 = vmatprep.subr.bf16.mxu0 %v1525_v22 }
 0x7be   :  { %1302 = vmatpush1.bf16.msra.mxu0 %v1533_v25 }
 0x7bf   :  { %1304 = vmatprep.subr.bf16.mxu0 %v1545_v29 }
 0x7c2   :  { %1306 = vmatpush1.bf16.msra.mxu0 %v1557_v33 }
 0x7c3   :  { %1308 = vmatprep.subr.bf16.mxu0 %v1561_v34 }
 0x7c6   :  { %1310 = vmatpush1.bf16.msra.mxu0 %v1573_v37 }
 0x88c   :  { %v735_v51 = vpop.f32.mrb[18].mxu0 }
 0x88d   :  { %v740_v53 = vadd.f32 %v735_v51, %v1681_v52  ;;  %v737_v54 = vpop.f32.mrb[19].mxu0 }
 0x88e   :  { %v747_v60 = vadd.f32 %v1608_v55, %v737_v54  ;;  %v1099_v54 = vld [vmem:[#allocation3 + $0x18] sm:$0xff] }
 0x88f   :  { %v1184_v56 = vmul.f32 -1.442695, %v740_v53 }
 0x891   :  { %1358 = vpow2.f32 %v1184_v56 }
 0x89b   :  { %v1359_v58 = vpop.eup %1358 }
 0x89c   :  { %v744_v59 = vadd.f32 1.0, %v1359_v58 }
 0x89e   :  { %1360 = vrcp.f32 %v744_v59  ;;  %v1097_v59 = vld [vmem:[#allocation3 + $0x8] sm:$0xff] }
 0x8a8   :  { %v1361_v62 = vpop.eup %1360 }
 0x8a9   :  { %v748_v63 = vmul.f32 %v1361_v62, %v747_v60  ;;  %v751_v5 = vsub.f32 1.0, %v1361_v62  ;;  %v757_v52 = vmul.f32 %v1361_v62, %v1733_v49 }
 0x8ab   :  { %v749_v2 = vadd.f32 %v748_v63, %v666_v0 }
 0x8ad   :  { %1362 = vtanh.f32 %v749_v2 }
 0x8b7   :  { %v1363_v4 = vpop.eup %1362 }
 0x8b8   :  { %753 = vrot.lane.b32.xlu0 %v1363_v4, %s1431_s26 }
 0x92a   :  { %v754_v43 = vpop.permute.xlu0 %753 }
 0x92b   :  { %v756_v44 = vmul.f32 %v754_v43, %v751_v5 }
 0x92d   :  { %v758_v6 = vadd.f32 %v757_v52, %v756_v44 }
 0x92f   :  { %760 = vrot.lane.b32.xlu1 %v758_v6, %s1431_s26 }
 0x9a1   :  { %v761_v8 = vpop.permute.xlu1 %760 }
 0x9a2   :  { %764 = vst.msk [vmem:[#allocation3 + $0x20] sm:$0xff] %vm52_vm0, %v761_v8  ;;  %1185 = vmatmul.mubr.msk.f32.vlgmr.msra.gmra.mrb[6].mxu1 %vm191_vm1, %v761_v8 }
 0x9a3   :  { %1314 = vmatpush1.bf16.msra.mxu1 %v1503_v13  ;;  %1057 = vmatprep.mubr.f32.mxu1 %v1430_v7 }
 0x9a4   :  { %1316 = vmatprep.subr.bf16.mxu1 %v1525_v22 }
 0x9a7   :  { %1318 = vmatpush1.bf16.msra.mxu1 %v1533_v25 }
 0x9a8   :  { %1320 = vmatprep.subr.bf16.mxu1 %v1545_v29  ;;  %v774_v29 = vld [vmem:[#allocation2 + $0x58] sm:$0xff] }
 0x9ab   :  { %1322 = vmatpush1.bf16.msra.mxu1 %v1557_v33 }
 0x9ac   :  { %1324 = vmatprep.subr.bf16.mxu1 %v1561_v34 }
 0x9af   :  { %1326 = vmatpush1.bf16.msra.mxu1 %v1573_v37 }
 0xa75   :  { %v843_v10 = vpop.f32.mrb[6].mxu1 }
 0xa76   :  { %v848_v11 = vadd.f32 %v843_v10, %v1686_v57  ;;  %v845_v12 = vpop.f32.mrb[7].mxu1 }
 0xa77   :  { %v855_v22 = vadd.f32 %v1608_v55, %v845_v12 }
 0xa78   :  { %v1186_v14 = vmul.f32 -1.442695, %v848_v11 }
 0xa7a   :  { %1364 = vpow2.f32 %v1186_v14 }
 0xa84   :  { %v1365_v13 = vpop.eup %1364 }
 0xa85   :  { %v852_v7 = vadd.f32 1.0, %v1365_v13 }
 0xa87   :  { %1366 = vrcp.f32 %v852_v7 }
 0xa91   :  { %v1367_v25 = vpop.eup %1366 }
 0xa92   :  { %v856_v15 = vmul.f32 %v1367_v25, %v855_v22  ;;  %v859_v34 = vsub.f32 1.0, %v1367_v25  ;;  %v865_v17 = vmul.f32 %v1367_v25, %v758_v6 }
 0xa94   :  { %v857_v16 = vadd.f32 %v856_v15, %v774_v29  ;;  %v1100_v29 = vld [vmem:[#allocation3 + $0x20] sm:$0xff] }
 0xa96   :  { %1368 = vtanh.f32 %v857_v16 }
 0xaa0   :  { %v1369_v33 = vpop.eup %1368 }
 0xaa1   :  { %861 = vrot.lane.b32.xlu0 %v1369_v33, %s1431_s26 }
 0xb13   :  { %v862_v37 = vpop.permute.xlu0 %861 }
 0xb14   :  { %v864_v57 = vmul.f32 %v862_v37, %v859_v34  ;;  %v1098_v34 = vld [vmem:[#allocation3 + $0x10] sm:$0xff] }
 0xb16   :  { %v1765_v18 = vadd.f32 %v865_v17, %v864_v57 }
 0xb18   :  { %868 = vrot.lane.b32.xlu1 %v1765_v18, %s1431_s26 }
 0xb8a   :  { %v869_v19 = vpop.permute.xlu1 %868 }
 0xb8b   :  { %872 = vst.msk [vmem:[#allocation3 + $0x28] sm:$0xff] %vm52_vm0, %v869_v19  ;;  %1187 = vmatmul.mubr.msk.f32.vlgmr.msra.gmra.mrb[20].mxu0 %vm191_vm1, %v869_v19 }
 0xb92   :  { %v1101_v50 = vld [vmem:[#allocation3 + $0x28] sm:$0xff] }
 0xc5e   :  { %v951_v20 = vpop.f32.mrb[20].mxu0 }
 0xc5f   :  { %v956_v21 = vadd.f32 %v951_v20, %v1691_v61  ;;  %v953_v23 = vpop.f32.mrb[21].mxu0 }
 0xc60   :  { %v963_v30 = vadd.f32 %v1608_v55, %v953_v23 }
 0xc61   :  { %v1188_v26 = vmul.f32 -1.442695, %v956_v21 }
 0xc63   :  { %1370 = vpow2.f32 %v1188_v26 }
 0xc6d   :  { %v1371_v27 = vpop.eup %1370 }
 0xc6e   :  { %v960_v28 = vadd.f32 1.0, %v1371_v27 }
 0xc70   :  { %1372 = vrcp.f32 %v960_v28 }
 0xc7a   :  { %v1373_v31 = vpop.eup %1372 }
 0xc7b   :  { %v964_v32 = vmul.f32 %v1373_v31, %v963_v30  ;;  %v967_v39 = vsub.f32 1.0, %v1373_v31  ;;  %v973_v61 = vmul.f32 %v1373_v31, %v1765_v18 }
 0xc7d   :  { %v965_v36 = vadd.f32 %v964_v32, %v882_v35 }
 0xc7f   :  { %1374 = vtanh.f32 %v965_v36 }
 0xc89   :  { %v1375_v38 = vpop.eup %1374 }
 0xc8a   :  { %969 = vrot.lane.b32.xlu0 %v1375_v38, %s1431_s26 }
 0xcfc   :  { %v970_v41 = vpop.permute.xlu0 %969 }
 0xcfd   :  { %v972_v42 = vmul.f32 %v970_v41, %v967_v39 }
 0xcff   :  { %v974_v45 = vadd.f32 %v973_v61, %v972_v42 }
 0xd01   :  { %976 = vrot.lane.b32.xlu1 %v974_v45, %s1431_s26 }
 0xd05   :  { %333 = vrot.lane.b32.xlu1 %v1617_v3, %s1432_s0 }
 0xd09   :  { %549 = vrot.lane.b32.xlu1 %v1714_v24, %s1432_s0 }
 0xd0d   :  { %765 = vrot.lane.b32.xlu1 %v758_v6, %s1432_s0  ;;  %v990_v6 = vld [vmem:[#allocation2 + $0x78] sm:$0xff] }
 0xd11   :  { %981 = vrot.lane.b32.xlu1 %v974_v45, %s1432_s0 }
 0xd73   :  { %v977_v9 = vpop.permute.xlu1 %976 }
 0xd74   :  { %980 = vst.msk [vmem:[#allocation3 + $0x30] sm:$0xff] %vm52_vm0, %v977_v9  ;;  %1189 = vmatmul.mubr.msk.f32.vlgmr.msra.gmra.mrb[8].mxu1 %vm191_vm1, %v977_v9 }
 0xd77   :  { %v334_v46 = vpop.permute.xlu1 %333 }
 0xd78   :  { %337 = vst.msk [vmem:[#allocation4 + $0x38] sm:$0xff] %vm52_vm0, %v334_v46 }
 0xd7b   :  { %v550_v47 = vpop.permute.xlu1 %549  ;;  %v1102_v22 = vld [vmem:[#allocation3 + $0x30] sm:$0xff] }
 0xd7c   :  { %553 = vst.msk [vmem:[#allocation4 + $0x28] sm:$0xff] %vm52_vm0, %v550_v47 }
 0xd7f   :  { %v766_v48 = vpop.permute.xlu1 %765 }
 0xd80   :  { %769 = vst.msk [vmem:[#allocation4 + $0x18] sm:$0xff] %vm52_vm0, %v766_v48 }
 0xd83   :  { %v1109_v3 = vld [vmem:[#allocation4 + $0x28] sm:$0xff]  ;;  %v982_v24 = vpop.permute.xlu1 %981 }
 0xd84   :  { %985 = vst.msk [vmem:[#allocation4 + $0x8] sm:$0xff] %vm52_vm0, %v982_v24  ;;  %v1117_v51 = vadd.f32 %v1109_v3, %v1101_v50 }
 0xd86   :  { %1125 = vst.msk [vmem:[#allocation5 + $0x28] sm:$0xff] %vm52_vm0, %v1117_v51 }
 0xd87   :  { %v1107_v53 = vld [vmem:[#allocation4 + $0x18] sm:$0xff] }
 0xd88   :  { %v1115_v56 = vadd.f32 %v1107_v53, %v1099_v54 }
 0xd8a   :  { %1123 = vst.msk [vmem:[#allocation5 + $0x18] sm:$0xff] %vm52_vm0, %v1115_v56 }
 0xd8b   :  { %v1105_v58 = vld [vmem:[#allocation4 + $0x8] sm:$0xff] }
 0xd8c   :  { %v1113_v60 = vadd.f32 %v1105_v58, %v1097_v59 }
 0xd8e   :  { %1121 = vst.msk [vmem:[#allocation5 + $0x8] sm:$0xff] %vm52_vm0, %v1113_v60 }
 0xe47   :  { %v1059_v62 = vpop.f32.mrb[8].mxu1 }
 0xe48   :  { %v1064_v63 = vadd.f32 %v1059_v62, %v1696_v1  ;;  %v1061_v0 = vpop.f32.mrb[9].mxu1 }
 0xe49   :  { %v1071_v43 = vadd.f32 %v1608_v55, %v1061_v0 }
 0xe4a   :  { %v1190_v2 = vmul.f32 -1.442695, %v1064_v63 }
 0xe4c   :  { %1376 = vpow2.f32 %v1190_v2 }
 0xe56   :  { %v1377_v4 = vpop.eup %1376 }
 0xe57   :  { %v1068_v5 = vadd.f32 1.0, %v1377_v4 }
 0xe59   :  { %1378 = vrcp.f32 %v1068_v5 }
 0xe63   :  { %v1379_v52 = vpop.eup %1378 }
 0xe64   :  { %v1072_v44 = vmul.f32 %v1379_v52, %v1071_v43  ;;  %v1075_v1 = vsub.f32 1.0, %v1379_v52  ;;  %v1081_v55 = vmul.f32 %v1379_v52, %v974_v45 }
 0xe66   :  { %v1073_v8 = vadd.f32 %v1072_v44, %v990_v6 }
 0xe68   :  { %1380 = vtanh.f32 %v1073_v8 }
 0xe72   :  { %v1381_v10 = vpop.eup %1380 }
 0xe73   :  { %1077 = vrot.lane.b32.xlu0 %v1381_v10, %s1431_s26 }
 0xe77   :  { %441 = vrot.lane.b32.xlu0 %v1668_v40, %s1432_s0 }
 0xe7b   :  { %657 = vrot.lane.b32.xlu0 %v1733_v49, %s1432_s0 }
 0xe7f   :  { %873 = vrot.lane.b32.xlu0 %v1765_v18, %s1432_s0 }
 0xee5   :  { %v1078_v11 = vpop.permute.xlu0 %1077 }
 0xee6   :  { %v1080_v12 = vmul.f32 %v1078_v11, %v1075_v1 }
 0xee8   :  { %v1082_v14 = vadd.f32 %v1081_v55, %v1080_v12 }
 0xee9   :  { %v442_v13 = vpop.permute.xlu0 %441 }
 0xeea   :  { %445 = vst.msk [vmem:[#allocation4 + $0x30] sm:$0xff] %vm52_vm0, %v442_v13  ;;  %1089 = vrot.lane.b32.xlu1 %v1082_v14, %s1432_s0  ;;  %1084 = vrot.lane.b32.xlu0 %v1082_v14, %s1431_s26 }
 0xeed   :  { %v658_v7 = vpop.permute.xlu0 %657 }
 0xeee   :  { %661 = vst.msk [vmem:[#allocation4 + $0x20] sm:$0xff] %vm52_vm0, %v658_v7 }
 0xef1   :  { %v1110_v40 = vld [vmem:[#allocation4 + $0x30] sm:$0xff]  ;;  %v874_v49 = vpop.permute.xlu0 %873 }
 0xef2   :  { %877 = vst.msk [vmem:[#allocation4 + $0x10] sm:$0xff] %vm52_vm0, %v874_v49  ;;  %v1118_v25 = vadd.f32 %v1110_v40, %v1102_v22 }
 0xef4   :  { %1126 = vst.msk [vmem:[#allocation5 + $0x30] sm:$0xff] %vm52_vm0, %v1118_v25 }
 0xef5   :  { %v1108_v15 = vld [vmem:[#allocation4 + $0x20] sm:$0xff] }
 0xef6   :  { %v1116_v16 = vadd.f32 %v1108_v15, %v1100_v29 }
 0xef8   :  { %1124 = vst.msk [vmem:[#allocation5 + $0x20] sm:$0xff] %vm52_vm0, %v1116_v16 }
 0xef9   :  { %v1106_v33 = vld [vmem:[#allocation4 + $0x10] sm:$0xff] }
 0xefa   :  { %v1114_v37 = vadd.f32 %v1106_v33, %v1098_v34 }
 0xefc   :  { %1122 = vst.msk [vmem:[#allocation5 + $0x10] sm:$0xff] %vm52_vm0, %v1114_v37 }
 0xf5c   :  { %v1085_v17 = vpop.permute.xlu0 %1084  ;;  %v1090_v57 = vpop.permute.xlu1 %1089 }
 0xf5d   :  { %1088 = vst.msk [vmem:[#allocation3 + $0x38] sm:$0xff] %vm52_vm0, %v1085_v17  ;;  %1093 = vst.msk [vmem:[#allocation7] sm:$0xff] %vm52_vm0, %v1085_v17 }
 0xf5e   :  { %1092 = vst.msk [vmem:[#allocation4] sm:$0xff] %vm52_vm0, %v1090_v57  ;;  %1095 = vst.msk [vmem:[#allocation7 + $0x8] sm:$0xff] %vm52_vm0, %v1090_v57 }
 0xf5f   :  { %1393 = shalt.err (!%p1390_p4)
}
 0xf60   :  { %s1394_s18 = scalar_lea.hbm %s1844_s6, 256 }
 0xf61   :  { %p1395_p5 = scmp.ne.s32.totalorder %s1844_s6, %s1394_s18  ;;  %p1398_p6 = scmp.lt.u32.totalorder %s1394_s18, %s1844_s6 }
 0xf63   :  { %p1400_p7 = pnand %p1398_p6, %p1395_p5 }
 0xf65   :  { %1403 = shalt.err (!%p1400_p7)
}
 0xf66   :  { %s1434_s22 = smov 128   ;;  %s1435_s2 = smov 8   ;;  %v1096_v18 = vld [vmem:[#allocation3] sm:$0xff]  ;;  %v1111_v19 = vld [vmem:[#allocation4 + $0x38] sm:$0xff] }
 0xf67   :  { %1151 = dma.vmem_to_hbm [thread:$0]  %s1146_s14, 256, %s1844_s6, [#allocation8], %s1434_s22, %s1434_s22, %s1435_s2   ;;  %v1103_v20 = vld [vmem:[#allocation3 + $0x38] sm:$0xff]  ;;  %v1104_v21 = vld [vmem:[#allocation4] sm:$0xff] }
 0xf68   :  { %s1436_s25 = smov [#allocation5]   ;;  %v1112_v23 = vadd.f32 %v1104_v21, %v1096_v18  ;;  %v1119_v26 = vadd.f32 %v1111_v19, %v1103_v20 }
 0xf69   :  { %s1133_s26 = sshll.u32 %s1436_s25, 4  ;;  %s1134_s26 = int_to_ptr.vmem [resolvable:$true] %s1133_s26 }
 0xf6a   :  { %1120 = vst.msk [vmem:[#allocation5] sm:$0xff] %vm52_vm0, %v1112_v23  ;;  %1127 = vst.msk [vmem:[#allocation5 + $0x38] sm:$0xff] %vm52_vm0, %v1119_v26  ;;  %s1404_s4 = scalar_lea.vmem %s1134_s26, 1024  ;;  %p1409_p9 = scmp.lt.s32.totalorder %s1134_s26, %s1134_s26 }
 0xf6b   :  { %p1405_p8 = scmp.ne.s32.totalorder %s1134_s26, %s1404_s4  ;;  %p1410_p10 = scmp.lt.s32.totalorder %s1404_s4, %s1404_s4 }
 0xf6d   :  { %p1411_p11 = por %p1410_p10, %p1409_p9 }
 0xf6f   :  { %p1412_p12 = pnand %p1411_p11, %p1405_p8 }
 0xf71   :  { %1415 = shalt.err (!%p1412_p12)
}
 0xf72   :  { %s1416_s27 = scalar_lea.hbm %s1843_s5, 1024 }
 0xf73   :  { %p1417_p13 = scmp.ne.s32.totalorder %s1843_s5, %s1416_s27  ;;  %p1420_p0 = scmp.lt.u32.totalorder %s1416_s27, %s1843_s5 }
 0xf75   :  { %p1422_p1 = pnand %p1420_p0, %p1417_p13 }
 0xf77   :  { %1425 = shalt.err (!%p1422_p1)
}
 0xf78   :  { %1139 = dma.vmem_to_hbm [thread:$0]  %s1134_s26, 1024, %s1843_s5, [#allocation6], %s1434_s22, %s1434_s22, %s1435_s2  }
 0xf79   :  { %1426 = dma.done.wait [#allocation6], 1024  }
 0xf7a   :  { %1427 = vsyncadd [#allocation6], 4294966272 }
 0xf7b   :  { %1428 = dma.done.wait [#allocation8], 256  }
 0xf7c   :  { %1429 = vsyncadd [#allocation8], 4294967040 }
 0xf7d   :  { %1158 = vsyncpa [#allocation6], 1 }
 0xf7e   :  { %1159 = vsyncpa [#allocation8], 1 }

</bundles_post_ra>
